<compile_context>
chip_gen: v6e
topology: v6e:2x2x1
jax: 0.10.0
libtpu: 0.0.40
codegen_flags: <defaults>
</compile_context>

<pallas_src>
import functools

import jax
import jax.numpy as jnp
import numpy as np
from jax.experimental import pallas as pl
from jax.experimental.pallas import tpu as pltpu


def _round_up(x, m):
    return ((x + m - 1) // m) * m


# --------------------------- fused decoder-step kernel ---------------------------

def _make_decoder_kernel(L, H):
    """Builds the fused kernel for a static number of LSTM layers L."""

    def kernel(*refs):
        x_ref, key_ref, enc_ref, h0_ref, c0_ref = refs[0:5]
        w_refs = refs[5:5 + L]                      # per-layer [Din_l + H, 4H]
        b_refs = refs[5 + L:5 + 2 * L]              # per-layer [1, 4H]
        (we_ref, wh_ref, bterm_ref,
         wlhT_ref, wlcT_ref, wlkT_ref, bl_ref,
         woT_ref, bo_ref) = refs[5 + 2 * L:5 + 2 * L + 9]
        h_out_ref, c_out_ref, attn_out_ref, final_out_ref = refs[5 + 2 * L + 9:]

        # ---------------- L stacked LSTM layers (seq_len == 1), unrolled ----------------
        layer_in = x_ref[...]                                       # [Bp, 2E]
        for l in range(L):
            h_prev = h0_ref[l]                                      # [Bp, H]
            c_prev = c0_ref[l]                                      # [Bp, H]
            # single concatenated-gate MXU matmul per layer
            xh = jnp.concatenate([layer_in, h_prev], axis=-1)       # [Bp, Din+H]
            gates = (jnp.dot(xh, w_refs[l][...],
                             preferred_element_type=jnp.float32)
                     + b_refs[l][...])                              # [Bp, 4H]
            # whole-vector nonlinearities (full-vreg EUP inputs), then slice
            sg = jax.nn.sigmoid(gates)
            tg = jnp.tanh(gates)
            i = sg[:, 0 * H:1 * H]
            f = sg[:, 1 * H:2 * H]
            g = tg[:, 2 * H:3 * H]
            o = sg[:, 3 * H:4 * H]
            c_new = f * c_prev + i * g
            h_new = o * jnp.tanh(c_new)
            h_out_ref[l] = h_new
            c_out_ref[l] = c_new
            layer_in = h_new

        hid = layer_in                                              # [Bp, H] (top layer)
        key = key_ref[...]                                          # [Bp, E]
        enc = enc_ref[...]                                          # [Bp, S, H]

        # ------------- additive attention (v folded into the linear at init) -------------
        we = we_ref[...]                                            # [1, H]
        e_enc = jnp.sum(enc * we.reshape(1, 1, H), axis=-1)         # [Bp, S]
        e_hid = (jnp.sum(hid * wh_ref[...], axis=-1, keepdims=True)
                 + bterm_ref[...])                                  # [Bp, 1]
        energy = e_enc + e_hid                                      # [Bp, S]

        m = jnp.max(energy, axis=-1, keepdims=True)
        p = jnp.exp(energy - m)
        denom = jnp.sum(p, axis=-1, keepdims=True)
        attn = p * pl.reciprocal(denom, approx=True)                # [Bp, S] lane-dense
        attn_out_ref[...] = attn

        # context = attn_weights.bmm(encoder_outputs)  (query length 1)
        context = jnp.sum(attn[:, :, None] * enc, axis=1)           # [Bp, H]

        # attn_linear(cat(outputs, context, key_embed)) as split matmuls, tanh, out proj
        pre = (jnp.dot(hid, wlhT_ref[...], preferred_element_type=jnp.float32)
               + jnp.dot(context, wlcT_ref[...], preferred_element_type=jnp.float32)
               + jnp.dot(key, wlkT_ref[...], preferred_element_type=jnp.float32)
               + bl_ref[...])
        out_tmp = jnp.tanh(pre)                                     # [Bp, H]
        final_out_ref[...] = (jnp.dot(out_tmp, woT_ref[...],
                                      preferred_element_type=jnp.float32)
                              + bo_ref[...])                        # [Bp, Opad]

    return kernel


def _decoder_step_pallas(x, key_embed, enc, h0, c0, wcats, biases, attn_args):
    L, Bp, H = h0.shape
    S = enc.shape[1]
    E = key_embed.shape[1]
    Opad = attn_args[-2].shape[1]

    vmem = pl.BlockSpec(memory_space=pltpu.MemorySpace.VMEM)
    n_in = 5 + 2 * L + 9

    # advisory cost estimate for the XLA scheduler
    flops = 0
    for w in wcats:
        flops += 2 * Bp * w.shape[0] * w.shape[1] + 10 * Bp * H
    flops += 2 * Bp * S * H * 2                      # attention energy + context
    flops += 2 * Bp * H * (2 * H + E)                # attn_linear
    flops += 2 * Bp * H * Opad                       # output projection
    transcendentals = L * Bp * (8 * H + H) + Bp * S + Bp * H + Bp
    in_arrays = [x, key_embed, enc, h0, c0, *wcats, *biases, *attn_args]
    bytes_in = sum(int(a.size) * a.dtype.itemsize for a in in_arrays)
    bytes_out = (2 * L * Bp * H + Bp * S + Bp * Opad) * 4

    return pl.pallas_call(
        _make_decoder_kernel(L, H),
        out_shape=(jax.ShapeDtypeStruct((L, Bp, H), jnp.float32),   # h
                   jax.ShapeDtypeStruct((L, Bp, H), jnp.float32),   # c
                   jax.ShapeDtypeStruct((Bp, S), jnp.float32),      # attn (lane-dense)
                   jax.ShapeDtypeStruct((Bp, Opad), jnp.float32)),  # final (padded)
        in_specs=[vmem] * n_in,
        out_specs=(vmem, vmem, vmem, vmem),
        input_output_aliases={3: 0, 4: 1},           # h0 -> h, c0 -> c (in-place state)
        cost_estimate=pl.CostEstimate(flops=flops,
                                      transcendentals=transcendentals,
                                      bytes_accessed=bytes_in + bytes_out),
    )(x, key_embed, enc, h0, c0, *wcats, *biases, *attn_args)


# --------------------------------- params ---------------------------------

def init_params(key, V, E, H, O, L):
    keys = jax.random.split(key, 64)
    it = iter(keys)

    def nrm(shape, scale=0.1):
        return jax.random.normal(next(it), shape, dtype=jnp.float32) * scale

    p = {'embedding': nrm((V, E)), 'lstm': []}
    for l in range(L):
        din = 2 * E if l == 0 else H
        w_ih = nrm((4 * H, din))
        w_hh = nrm((4 * H, H))
        b_ih = nrm((4 * H,))
        b_hh = nrm((4 * H,))
        # concatenated-gate layout: gates = [x, h] @ wcat + b   (PyTorch i,f,g,o order)
        wcat = jnp.concatenate([w_ih.T, w_hh.T], axis=0)        # [din + H, 4H]
        p['lstm'].append(dict(wcat=wcat, b=(b_ih + b_hh).reshape(1, 4 * H)))

    # AttentionModel: attn = Linear(2H -> H), v = [1, H]
    wa = nrm((H, 2 * H))
    ba = nrm((H,))
    v = nrm((1, H))
    p['wah'], p['wae'] = wa[:, :H], wa[:, H:]      # raw (used by the reference)
    p['ba'], p['v'] = ba.reshape(1, H), v
    # fold v into the attention linear (valid: no nonlinearity between them)
    p['wh_row'] = (v @ wa[:, :H]).reshape(1, H)
    p['we_row'] = (v @ wa[:, H:]).reshape(1, H)
    p['b_term'] = (v @ ba.reshape(H, 1)).reshape(1, 1)

    # attn_linear = Linear(2H + E -> H), split along the concat axis
    wl = nrm((H, 2 * H + E))
    p['wlhT'] = wl[:, :H].T
    p['wlcT'] = wl[:, H:2 * H].T
    p['wlkT'] = wl[:, 2 * H:].T
    p['bl'] = nrm((H,)).reshape(1, H)

    # outLayer = Linear(H -> O); pad output lanes to a multiple of 128
    wo = nrm((O, H))
    bo = nrm((O,))
    Opad = max(128, _round_up(O, 128))
    p['woT_pad'] = jnp.zeros((H, Opad), jnp.float32).at[:, :O].set(wo.T)
    p['bo_pad'] = jnp.zeros((1, Opad), jnp.float32).at[:, :O].set(bo)
    return p


# ------------------------------- full forward -------------------------------

@functools.partial(jax.jit, static_argnames=('out_size',))
def decoder_forward(params, encoder_outputs, input_seq, keyword, last_hidden, *,
                    out_size):
    h0, c0 = last_hidden
    B, S, H = encoder_outputs.shape
    L = h0.shape[0]

    emb = params['embedding']
    sos_embed = emb[input_seq[:, 0]]                 # [B, E]  (seq_len == 1)
    key_embed = emb[keyword]                         # [B, E]
    x = jnp.concatenate([sos_embed, key_embed], -1)  # [B, 2E]

    # pad batch to a sublane multiple so every vector op works on full vregs
    Bp = _round_up(B, 8)
    pad_b = Bp - B

    def padb(a, axis):
        if pad_b == 0:
            return a
        widths = [(0, 0)] * a.ndim
        widths[axis] = (0, pad_b)
        return jnp.pad(a, widths)

    x_p = padb(x, 0)
    key_p = padb(key_embed, 0)
    enc_p = padb(encoder_outputs, 0)
    h0_p = padb(h0, 1)
    c0_p = padb(c0, 1)

    wcats = [lp['wcat'] for lp in params['lstm']]
    biases = [lp['b'] for lp in params['lstm']]
    attn_args = (params['we_row'], params['wh_row'], params['b_term'],
                 params['wlhT'], params['wlcT'], params['wlkT'], params['bl'],
                 params['woT_pad'], params['bo_pad'])

    h_new, c_new, attn, final = _decoder_step_pallas(
        x_p, key_p, enc_p, h0_p, c0_p, wcats, biases, attn_args)

    final = final[:B, :out_size]                     # [B, O]
    attn_weights = attn[:B].reshape(B, 1, S)         # [B, 1, S]
    return final, (h_new[:, :B], c_new[:, :B]), attn_weights


# ------------------------- pure-JAX reference check -------------------------

def reference_forward(params, encoder_outputs, input_seq, keyword, last_hidden, *,
                      out_size):
    h0, c0 = last_hidden
    emb = params['embedding']
    sos = emb[input_seq[:, 0]]
    keyv = emb[keyword]
    x = jnp.concatenate([sos, keyv], -1)
    H = h0.shape[-1]
    hs, cs = [], []
    layer_in = x
    for l, lp in enumerate(params['lstm']):
        xh = jnp.concatenate([layer_in, h0[l]], -1)
        gates = xh @ lp['wcat'] + lp['b'][0]
        i = jax.nn.sigmoid(gates[:, :H])
        f = jax.nn.sigmoid(gates[:, H:2 * H])
        g = jnp.tanh(gates[:, 2 * H:3 * H])
        o = jax.nn.sigmoid(gates[:, 3 * H:])
        c_new = f * c0[l] + i * g
        h_new = o * jnp.tanh(c_new)
        hs.append(h_new)
        cs.append(c_new)
        layer_in = h_new
    hid = hs[-1]
    proj = (jnp.einsum('bh,kh->bk', hid, params['wah'])[:, None, :]
            + jnp.einsum('bsh,kh->bsk', encoder_outputs, params['wae'])
            + params['ba'][0])
    energy = jnp.einsum('bsk,k->bs', proj, params['v'][0])
    attn = jax.nn.softmax(energy, axis=1)
    context = jnp.einsum('bs,bsh->bh', attn, encoder_outputs)
    pre = (hid @ params['wlhT'] + context @ params['wlcT']
           + keyv @ params['wlkT'] + params['bl'][0])
    out_tmp = jnp.tanh(pre)
    final = out_tmp @ params['woT_pad'][:, :out_size] + params['bo_pad'][0, :out_size]
    return final, (jnp.stack(hs), jnp.stack(cs)), attn[:, None, :]


if __name__ == "__main__":
    B, S, E, H, O, V, L = 2, 8, 16, 32, 24, 50, 4
    root = jax.random.PRNGKey(0)
    kp, ke, ki, kk, kh, kc = jax.random.split(root, 6)

    params = init_params(kp, V, E, H, O, L)
    encoder_outputs = jax.random.normal(ke, (B, S, H), dtype=jnp.float32)
    input_seq = jax.random.randint(ki, (B, 1), 0, V, dtype=jnp.int32)
    keyword = jax.random.randint(kk, (B,), 0, V, dtype=jnp.int32)
    h0 = jax.random.normal(kh, (L, B, H), dtype=jnp.float32) * 0.1
    c0 = jax.random.normal(kc, (L, B, H), dtype=jnp.float32) * 0.1

    ref_final, (ref_h, ref_c), ref_attn = reference_forward(
        params, encoder_outputs, input_seq, keyword, (h0, c0), out_size=O)

    final, (h, c), attn_w = decoder_forward(
        params, encoder_outputs, input_seq, keyword, (h0, c0), out_size=O)
    jax.block_until_ready((final, h, c, attn_w))

    np.testing.assert_allclose(np.asarray(final), np.asarray(ref_final),
                               atol=2e-3, rtol=2e-3)
    np.testing.assert_allclose(np.asarray(attn_w), np.asarray(ref_attn),
                               atol=2e-3, rtol=2e-3)
    np.testing.assert_allclose(np.asarray(h), np.asarray(ref_h),
                               atol=2e-3, rtol=2e-3)
    np.testing.assert_allclose(np.asarray(c), np.asarray(ref_c),
                               atol=2e-3, rtol=2e-3)
    print("KERNEL_OK")
</pallas_src>

<mosaic_0001>
module attributes {stable_mosaic.version = 11 : i64} {
  func.func @kernel(%arg0: memref<8x32xf32, #tpu.memory_space<vmem>>, %arg1: memref<8x16xf32, #tpu.memory_space<vmem>>, %arg2: memref<8x8x32xf32, #tpu.memory_space<vmem>>, %arg3: memref<4x8x32xf32, #tpu.memory_space<vmem>>, %arg4: memref<4x8x32xf32, #tpu.memory_space<vmem>>, %arg5: memref<64x128xf32, #tpu.memory_space<vmem>>, %arg6: memref<64x128xf32, #tpu.memory_space<vmem>>, %arg7: memref<64x128xf32, #tpu.memory_space<vmem>>, %arg8: memref<64x128xf32, #tpu.memory_space<vmem>>, %arg9: memref<1x128xf32, #tpu.memory_space<vmem>>, %arg10: memref<1x128xf32, #tpu.memory_space<vmem>>, %arg11: memref<1x128xf32, #tpu.memory_space<vmem>>, %arg12: memref<1x128xf32, #tpu.memory_space<vmem>>, %arg13: memref<1x32xf32, #tpu.memory_space<vmem>>, %arg14: memref<1x32xf32, #tpu.memory_space<vmem>>, %arg15: memref<1x1xf32, #tpu.memory_space<vmem>>, %arg16: memref<32x32xf32, #tpu.memory_space<vmem>>, %arg17: memref<32x32xf32, #tpu.memory_space<vmem>>, %arg18: memref<16x32xf32, #tpu.memory_space<vmem>>, %arg19: memref<1x32xf32, #tpu.memory_space<vmem>>, %arg20: memref<32x128xf32, #tpu.memory_space<vmem>>, %arg21: memref<1x128xf32, #tpu.memory_space<vmem>>, %arg22: memref<4x8x32xf32, #tpu.memory_space<vmem>>, %arg23: memref<4x8x32xf32, #tpu.memory_space<vmem>>, %arg24: memref<8x8xf32, #tpu.memory_space<vmem>>, %arg25: memref<8x128xf32, #tpu.memory_space<vmem>>) attributes {dimension_semantics = [], scalar_prefetch = 0 : i64, scratch_operands = 0 : i64, tpu.core_type = #tpu.core_type<tc>} {
    %c0 = arith.constant 0 : index
    %c0_0 = arith.constant 0 : index
    %0 = vector.load %arg0[%c0, %c0_0] : memref<8x32xf32, #tpu.memory_space<vmem>>, vector<8x32xf32>
    %c0_1 = arith.constant 0 : index
    %c0_2 = arith.constant 0 : index
    %c0_3 = arith.constant 0 : index
    %1 = vector.load %arg3[%c0_1, %c0_2, %c0_3] : memref<4x8x32xf32, #tpu.memory_space<vmem>>, vector<1x8x32xf32>
    %2 = vector.shape_cast %1 : vector<1x8x32xf32> to vector<8x32xf32>
    %c0_4 = arith.constant 0 : index
    %c0_5 = arith.constant 0 : index
    %c0_6 = arith.constant 0 : index
    %3 = vector.load %arg4[%c0_4, %c0_5, %c0_6] : memref<4x8x32xf32, #tpu.memory_space<vmem>>, vector<1x8x32xf32>
    %4 = vector.shape_cast %3 : vector<1x8x32xf32> to vector<8x32xf32>
    %5 = tpu.concatenate %0, %2 in 1 : vector<8x32xf32>, vector<8x32xf32> -> vector<8x64xf32>
    %c0_7 = arith.constant 0 : index
    %c0_8 = arith.constant 0 : index
    %6 = vector.load %arg5[%c0_7, %c0_8] : memref<64x128xf32, #tpu.memory_space<vmem>>, vector<64x128xf32>
    %cst = arith.constant dense<0.000000e+00> : vector<8x128xf32>
    %7 = tpu.matmul %5, %6, %cst {dimension_numbers = #tpu.dot_dimension_numbers<[1], [0], [0], [1], [0, 0, 1, 1], [], []>} : vector<8x64xf32>, vector<64x128xf32>, vector<8x128xf32> -> vector<8x128xf32>
    %c0_9 = arith.constant 0 : index
    %c0_10 = arith.constant 0 : index
    %8 = vector.load %arg9[%c0_9, %c0_10] : memref<1x128xf32, #tpu.memory_space<vmem>>, vector<1x128xf32>
    %9 = vector.broadcast %8 : vector<1x128xf32> to vector<8x128xf32>
    %10 = arith.addf %7, %9 : vector<8x128xf32>
    %11 = arith.negf %10 : vector<8x128xf32>
    %12 = math.exp %11 : vector<8x128xf32>
    %cst_11 = arith.constant 1.000000e+00 : f32
    %13 = vector.broadcast %cst_11 : f32 to vector<8x128xf32>
    %14 = arith.addf %13, %12 : vector<8x128xf32>
    %15 = arith.divf %13, %14 : vector<8x128xf32>
    %16 = math.tanh %10 : vector<8x128xf32>
    %17 = vector.extract_strided_slice %15 {offsets = [0, 0], sizes = [8, 32], strides = [1, 1]} : vector<8x128xf32> to vector<8x32xf32>
    %18 = vector.extract_strided_slice %15 {offsets = [0, 32], sizes = [8, 32], strides = [1, 1]} : vector<8x128xf32> to vector<8x32xf32>
    %19 = vector.extract_strided_slice %16 {offsets = [0, 64], sizes = [8, 32], strides = [1, 1]} : vector<8x128xf32> to vector<8x32xf32>
    %20 = vector.extract_strided_slice %15 {offsets = [0, 96], sizes = [8, 32], strides = [1, 1]} : vector<8x128xf32> to vector<8x32xf32>
    %21 = arith.mulf %18, %4 : vector<8x32xf32>
    %22 = arith.mulf %17, %19 : vector<8x32xf32>
    %23 = arith.addf %21, %22 : vector<8x32xf32>
    %24 = math.tanh %23 : vector<8x32xf32>
    %25 = arith.mulf %20, %24 : vector<8x32xf32>
    %c0_12 = arith.constant 0 : index
    %c0_13 = arith.constant 0 : index
    %c0_14 = arith.constant 0 : index
    %26 = vector.load %arg22[%c0_12, %c0_13, %c0_14] : memref<4x8x32xf32, #tpu.memory_space<vmem>>, vector<1x8x32xf32>
    %27 = vector.shape_cast %26 : vector<1x8x32xf32> to vector<8x32xf32>
    %28 = vector.shape_cast %25 : vector<8x32xf32> to vector<1x8x32xf32>
    tpu.vector_store %arg22[%c0_12, %c0_13, %c0_14], %28 {strides = array<i32>} : memref<4x8x32xf32, #tpu.memory_space<vmem>>, vector<1x8x32xf32>,
    %c0_15 = arith.constant 0 : index
    %c0_16 = arith.constant 0 : index
    %c0_17 = arith.constant 0 : index
    %29 = vector.load %arg23[%c0_15, %c0_16, %c0_17] : memref<4x8x32xf32, #tpu.memory_space<vmem>>, vector<1x8x32xf32>
    %30 = vector.shape_cast %29 : vector<1x8x32xf32> to vector<8x32xf32>
    %31 = vector.shape_cast %23 : vector<8x32xf32> to vector<1x8x32xf32>
    tpu.vector_store %arg23[%c0_15, %c0_16, %c0_17], %31 {strides = array<i32>} : memref<4x8x32xf32, #tpu.memory_space<vmem>>, vector<1x8x32xf32>,
    %c1 = arith.constant 1 : index
    %c0_18 = arith.constant 0 : index
    %c0_19 = arith.constant 0 : index
    %32 = vector.load %arg3[%c1, %c0_18, %c0_19] : memref<4x8x32xf32, #tpu.memory_space<vmem>>, vector<1x8x32xf32>
    %33 = vector.shape_cast %32 : vector<1x8x32xf32> to vector<8x32xf32>
    %c1_20 = arith.constant 1 : index
    %c0_21 = arith.constant 0 : index
    %c0_22 = arith.constant 0 : index
    %34 = vector.load %arg4[%c1_20, %c0_21, %c0_22] : memref<4x8x32xf32, #tpu.memory_space<vmem>>, vector<1x8x32xf32>
    %35 = vector.shape_cast %34 : vector<1x8x32xf32> to vector<8x32xf32>
    %36 = tpu.concatenate %25, %33 in 1 : vector<8x32xf32>, vector<8x32xf32> -> vector<8x64xf32>
    %c0_23 = arith.constant 0 : index
    %c0_24 = arith.constant 0 : index
    %37 = vector.load %arg6[%c0_23, %c0_24] : memref<64x128xf32, #tpu.memory_space<vmem>>, vector<64x128xf32>
    %cst_25 = arith.constant dense<0.000000e+00> : vector<8x128xf32>
    %38 = tpu.matmul %36, %37, %cst_25 {dimension_numbers = #tpu.dot_dimension_numbers<[1], [0], [0], [1], [0, 0, 1, 1], [], []>} : vector<8x64xf32>, vector<64x128xf32>, vector<8x128xf32> -> vector<8x128xf32>
    %c0_26 = arith.constant 0 : index
    %c0_27 = arith.constant 0 : index
    %39 = vector.load %arg10[%c0_26, %c0_27] : memref<1x128xf32, #tpu.memory_space<vmem>>, vector<1x128xf32>
    %40 = vector.broadcast %39 : vector<1x128xf32> to vector<8x128xf32>
    %41 = arith.addf %38, %40 : vector<8x128xf32>
    %42 = arith.negf %41 : vector<8x128xf32>
    %43 = math.exp %42 : vector<8x128xf32>
    %cst_28 = arith.constant 1.000000e+00 : f32
    %44 = vector.broadcast %cst_28 : f32 to vector<8x128xf32>
    %45 = arith.addf %44, %43 : vector<8x128xf32>
    %46 = arith.divf %44, %45 : vector<8x128xf32>
    %47 = math.tanh %41 : vector<8x128xf32>
    %48 = vector.extract_strided_slice %46 {offsets = [0, 0], sizes = [8, 32], strides = [1, 1]} : vector<8x128xf32> to vector<8x32xf32>
    %49 = vector.extract_strided_slice %46 {offsets = [0, 32], sizes = [8, 32], strides = [1, 1]} : vector<8x128xf32> to vector<8x32xf32>
    %50 = vector.extract_strided_slice %47 {offsets = [0, 64], sizes = [8, 32], strides = [1, 1]} : vector<8x128xf32> to vector<8x32xf32>
    %51 = vector.extract_strided_slice %46 {offsets = [0, 96], sizes = [8, 32], strides = [1, 1]} : vector<8x128xf32> to vector<8x32xf32>
    %52 = arith.mulf %49, %35 : vector<8x32xf32>
    %53 = arith.mulf %48, %50 : vector<8x32xf32>
    %54 = arith.addf %52, %53 : vector<8x32xf32>
    %55 = math.tanh %54 : vector<8x32xf32>
    %56 = arith.mulf %51, %55 : vector<8x32xf32>
    %c1_29 = arith.constant 1 : index
    %c0_30 = arith.constant 0 : index
    %c0_31 = arith.constant 0 : index
    %57 = vector.load %arg22[%c1_29, %c0_30, %c0_31] : memref<4x8x32xf32, #tpu.memory_space<vmem>>, vector<1x8x32xf32>
    %58 = vector.shape_cast %57 : vector<1x8x32xf32> to vector<8x32xf32>
    %59 = vector.shape_cast %56 : vector<8x32xf32> to vector<1x8x32xf32>
    tpu.vector_store %arg22[%c1_29, %c0_30, %c0_31], %59 {strides = array<i32>} : memref<4x8x32xf32, #tpu.memory_space<vmem>>, vector<1x8x32xf32>,
    %c1_32 = arith.constant 1 : index
    %c0_33 = arith.constant 0 : index
    %c0_34 = arith.constant 0 : index
    %60 = vector.load %arg23[%c1_32, %c0_33, %c0_34] : memref<4x8x32xf32, #tpu.memory_space<vmem>>, vector<1x8x32xf32>
    %61 = vector.shape_cast %60 : vector<1x8x32xf32> to vector<8x32xf32>
    %62 = vector.shape_cast %54 : vector<8x32xf32> to vector<1x8x32xf32>
    tpu.vector_store %arg23[%c1_32, %c0_33, %c0_34], %62 {strides = array<i32>} : memref<4x8x32xf32, #tpu.memory_space<vmem>>, vector<1x8x32xf32>,
    %c2 = arith.constant 2 : index
    %c0_35 = arith.constant 0 : index
    %c0_36 = arith.constant 0 : index
    %63 = vector.load %arg3[%c2, %c0_35, %c0_36] : memref<4x8x32xf32, #tpu.memory_space<vmem>>, vector<1x8x32xf32>
    %64 = vector.shape_cast %63 : vector<1x8x32xf32> to vector<8x32xf32>
    %c2_37 = arith.constant 2 : index
    %c0_38 = arith.constant 0 : index
    %c0_39 = arith.constant 0 : index
    %65 = vector.load %arg4[%c2_37, %c0_38, %c0_39] : memref<4x8x32xf32, #tpu.memory_space<vmem>>, vector<1x8x32xf32>
    %66 = vector.shape_cast %65 : vector<1x8x32xf32> to vector<8x32xf32>
    %67 = tpu.concatenate %56, %64 in 1 : vector<8x32xf32>, vector<8x32xf32> -> vector<8x64xf32>
    %c0_40 = arith.constant 0 : index
    %c0_41 = arith.constant 0 : index
    %68 = vector.load %arg7[%c0_40, %c0_41] : memref<64x128xf32, #tpu.memory_space<vmem>>, vector<64x128xf32>
    %cst_42 = arith.constant dense<0.000000e+00> : vector<8x128xf32>
    %69 = tpu.matmul %67, %68, %cst_42 {dimension_numbers = #tpu.dot_dimension_numbers<[1], [0], [0], [1], [0, 0, 1, 1], [], []>} : vector<8x64xf32>, vector<64x128xf32>, vector<8x128xf32> -> vector<8x128xf32>
    %c0_43 = arith.constant 0 : index
    %c0_44 = arith.constant 0 : index
    %70 = vector.load %arg11[%c0_43, %c0_44] : memref<1x128xf32, #tpu.memory_space<vmem>>, vector<1x128xf32>
    %71 = vector.broadcast %70 : vector<1x128xf32> to vector<8x128xf32>
    %72 = arith.addf %69, %71 : vector<8x128xf32>
    %73 = arith.negf %72 : vector<8x128xf32>
    %74 = math.exp %73 : vector<8x128xf32>
    %cst_45 = arith.constant 1.000000e+00 : f32
    %75 = vector.broadcast %cst_45 : f32 to vector<8x128xf32>
    %76 = arith.addf %75, %74 : vector<8x128xf32>
    %77 = arith.divf %75, %76 : vector<8x128xf32>
    %78 = math.tanh %72 : vector<8x128xf32>
    %79 = vector.extract_strided_slice %77 {offsets = [0, 0], sizes = [8, 32], strides = [1, 1]} : vector<8x128xf32> to vector<8x32xf32>
    %80 = vector.extract_strided_slice %77 {offsets = [0, 32], sizes = [8, 32], strides = [1, 1]} : vector<8x128xf32> to vector<8x32xf32>
    %81 = vector.extract_strided_slice %78 {offsets = [0, 64], sizes = [8, 32], strides = [1, 1]} : vector<8x128xf32> to vector<8x32xf32>
    %82 = vector.extract_strided_slice %77 {offsets = [0, 96], sizes = [8, 32], strides = [1, 1]} : vector<8x128xf32> to vector<8x32xf32>
    %83 = arith.mulf %80, %66 : vector<8x32xf32>
    %84 = arith.mulf %79, %81 : vector<8x32xf32>
    %85 = arith.addf %83, %84 : vector<8x32xf32>
    %86 = math.tanh %85 : vector<8x32xf32>
    %87 = arith.mulf %82, %86 : vector<8x32xf32>
    %c2_46 = arith.constant 2 : index
    %c0_47 = arith.constant 0 : index
    %c0_48 = arith.constant 0 : index
    %88 = vector.load %arg22[%c2_46, %c0_47, %c0_48] : memref<4x8x32xf32, #tpu.memory_space<vmem>>, vector<1x8x32xf32>
    %89 = vector.shape_cast %88 : vector<1x8x32xf32> to vector<8x32xf32>
    %90 = vector.shape_cast %87 : vector<8x32xf32> to vector<1x8x32xf32>
    tpu.vector_store %arg22[%c2_46, %c0_47, %c0_48], %90 {strides = array<i32>} : memref<4x8x32xf32, #tpu.memory_space<vmem>>, vector<1x8x32xf32>,
    %c2_49 = arith.constant 2 : index
    %c0_50 = arith.constant 0 : index
    %c0_51 = arith.constant 0 : index
    %91 = vector.load %arg23[%c2_49, %c0_50, %c0_51] : memref<4x8x32xf32, #tpu.memory_space<vmem>>, vector<1x8x32xf32>
    %92 = vector.shape_cast %91 : vector<1x8x32xf32> to vector<8x32xf32>
    %93 = vector.shape_cast %85 : vector<8x32xf32> to vector<1x8x32xf32>
    tpu.vector_store %arg23[%c2_49, %c0_50, %c0_51], %93 {strides = array<i32>} : memref<4x8x32xf32, #tpu.memory_space<vmem>>, vector<1x8x32xf32>,
    %c3 = arith.constant 3 : index
    %c0_52 = arith.constant 0 : index
    %c0_53 = arith.constant 0 : index
    %94 = vector.load %arg3[%c3, %c0_52, %c0_53] : memref<4x8x32xf32, #tpu.memory_space<vmem>>, vector<1x8x32xf32>
    %95 = vector.shape_cast %94 : vector<1x8x32xf32> to vector<8x32xf32>
    %c3_54 = arith.constant 3 : index
    %c0_55 = arith.constant 0 : index
    %c0_56 = arith.constant 0 : index
    %96 = vector.load %arg4[%c3_54, %c0_55, %c0_56] : memref<4x8x32xf32, #tpu.memory_space<vmem>>, vector<1x8x32xf32>
    %97 = vector.shape_cast %96 : vector<1x8x32xf32> to vector<8x32xf32>
    %98 = tpu.concatenate %87, %95 in 1 : vector<8x32xf32>, vector<8x32xf32> -> vector<8x64xf32>
    %c0_57 = arith.constant 0 : index
    %c0_58 = arith.constant 0 : index
    %99 = vector.load %arg8[%c0_57, %c0_58] : memref<64x128xf32, #tpu.memory_space<vmem>>, vector<64x128xf32>
    %cst_59 = arith.constant dense<0.000000e+00> : vector<8x128xf32>
    %100 = tpu.matmul %98, %99, %cst_59 {dimension_numbers = #tpu.dot_dimension_numbers<[1], [0], [0], [1], [0, 0, 1, 1], [], []>} : vector<8x64xf32>, vector<64x128xf32>, vector<8x128xf32> -> vector<8x128xf32>
    %c0_60 = arith.constant 0 : index
    %c0_61 = arith.constant 0 : index
    %101 = vector.load %arg12[%c0_60, %c0_61] : memref<1x128xf32, #tpu.memory_space<vmem>>, vector<1x128xf32>
    %102 = vector.broadcast %101 : vector<1x128xf32> to vector<8x128xf32>
    %103 = arith.addf %100, %102 : vector<8x128xf32>
    %104 = arith.negf %103 : vector<8x128xf32>
    %105 = math.exp %104 : vector<8x128xf32>
    %cst_62 = arith.constant 1.000000e+00 : f32
    %106 = vector.broadcast %cst_62 : f32 to vector<8x128xf32>
    %107 = arith.addf %106, %105 : vector<8x128xf32>
    %108 = arith.divf %106, %107 : vector<8x128xf32>
    %109 = math.tanh %103 : vector<8x128xf32>
    %110 = vector.extract_strided_slice %108 {offsets = [0, 0], sizes = [8, 32], strides = [1, 1]} : vector<8x128xf32> to vector<8x32xf32>
    %111 = vector.extract_strided_slice %108 {offsets = [0, 32], sizes = [8, 32], strides = [1, 1]} : vector<8x128xf32> to vector<8x32xf32>
    %112 = vector.extract_strided_slice %109 {offsets = [0, 64], sizes = [8, 32], strides = [1, 1]} : vector<8x128xf32> to vector<8x32xf32>
    %113 = vector.extract_strided_slice %108 {offsets = [0, 96], sizes = [8, 32], strides = [1, 1]} : vector<8x128xf32> to vector<8x32xf32>
    %114 = arith.mulf %111, %97 : vector<8x32xf32>
    %115 = arith.mulf %110, %112 : vector<8x32xf32>
    %116 = arith.addf %114, %115 : vector<8x32xf32>
    %117 = math.tanh %116 : vector<8x32xf32>
    %118 = arith.mulf %113, %117 : vector<8x32xf32>
    %c3_63 = arith.constant 3 : index
    %c0_64 = arith.constant 0 : index
    %c0_65 = arith.constant 0 : index
    %119 = vector.load %arg22[%c3_63, %c0_64, %c0_65] : memref<4x8x32xf32, #tpu.memory_space<vmem>>, vector<1x8x32xf32>
    %120 = vector.shape_cast %119 : vector<1x8x32xf32> to vector<8x32xf32>
    %121 = vector.shape_cast %118 : vector<8x32xf32> to vector<1x8x32xf32>
    tpu.vector_store %arg22[%c3_63, %c0_64, %c0_65], %121 {strides = array<i32>} : memref<4x8x32xf32, #tpu.memory_space<vmem>>, vector<1x8x32xf32>,
    %c3_66 = arith.constant 3 : index
    %c0_67 = arith.constant 0 : index
    %c0_68 = arith.constant 0 : index
    %122 = vector.load %arg23[%c3_66, %c0_67, %c0_68] : memref<4x8x32xf32, #tpu.memory_space<vmem>>, vector<1x8x32xf32>
    %123 = vector.shape_cast %122 : vector<1x8x32xf32> to vector<8x32xf32>
    %124 = vector.shape_cast %116 : vector<8x32xf32> to vector<1x8x32xf32>
    tpu.vector_store %arg23[%c3_66, %c0_67, %c0_68], %124 {strides = array<i32>} : memref<4x8x32xf32, #tpu.memory_space<vmem>>, vector<1x8x32xf32>,
    %c0_69 = arith.constant 0 : index
    %c0_70 = arith.constant 0 : index
    %125 = vector.load %arg1[%c0_69, %c0_70] : memref<8x16xf32, #tpu.memory_space<vmem>>, vector<8x16xf32>
    %c0_71 = arith.constant 0 : index
    %c0_72 = arith.constant 0 : index
    %c0_73 = arith.constant 0 : index
    %126 = vector.load %arg2[%c0_71, %c0_72, %c0_73] : memref<8x8x32xf32, #tpu.memory_space<vmem>>, vector<8x8x32xf32>
    %c0_74 = arith.constant 0 : index
    %c0_75 = arith.constant 0 : index
    %127 = vector.load %arg13[%c0_74, %c0_75] : memref<1x32xf32, #tpu.memory_space<vmem>>, vector<1x32xf32>
    %128 = vector.shape_cast %127 : vector<1x32xf32> to vector<1x1x32xf32>
    %129 = vector.broadcast %128 : vector<1x1x32xf32> to vector<8x8x32xf32>
    %130 = arith.mulf %126, %129 : vector<8x8x32xf32>
    %cst_76 = arith.constant dense<0.000000e+00> : vector<8x8xf32>
    %131 = vector.multi_reduction <add>, %130, %cst_76 [2] : vector<8x8x32xf32> to vector<8x8xf32>
    %c0_77 = arith.constant 0 : index
    %c0_78 = arith.constant 0 : index
    %132 = vector.load %arg14[%c0_77, %c0_78] : memref<1x32xf32, #tpu.memory_space<vmem>>, vector<1x32xf32>
    %133 = vector.broadcast %132 : vector<1x32xf32> to vector<8x32xf32>
    %134 = arith.mulf %118, %133 : vector<8x32xf32>
    %cst_79 = arith.constant dense<0.000000e+00> : vector<8xf32>
    %135 = vector.multi_reduction <add>, %134, %cst_79 [1] : vector<8x32xf32> to vector<8xf32>
    %136 = vector.shape_cast %135 : vector<8xf32> to vector<8x1xf32>
    %c0_80 = arith.constant 0 : index
    %c0_81 = arith.constant 0 : index
    %137 = vector.load %arg15[%c0_80, %c0_81] : memref<1x1xf32, #tpu.memory_space<vmem>>, vector<1x1xf32>
    %138 = vector.broadcast %137 : vector<1x1xf32> to vector<8x1xf32>
    %139 = arith.addf %136, %138 : vector<8x1xf32>
    %140 = vector.broadcast %139 : vector<8x1xf32> to vector<8x8xf32>
    %141 = arith.addf %131, %140 : vector<8x8xf32>
    %cst_82 = arith.constant dense<0xFF800000> : vector<8xf32>
    %142 = vector.multi_reduction <maximumf>, %141, %cst_82 [1] : vector<8x8xf32> to vector<8xf32>
    %143 = vector.shape_cast %142 : vector<8xf32> to vector<8x1xf32>
    %144 = vector.broadcast %143 : vector<8x1xf32> to vector<8x8xf32>
    %145 = arith.subf %141, %144 : vector<8x8xf32>
    %146 = math.exp %145 : vector<8x8xf32>
    %cst_83 = arith.constant dense<0.000000e+00> : vector<8xf32>
    %147 = vector.multi_reduction <add>, %146, %cst_83 [1] : vector<8x8xf32> to vector<8xf32>
    %148 = vector.shape_cast %147 : vector<8xf32> to vector<8x1xf32>
    %149 = tpu.reciprocal %148 {approx = true} : vector<8x1xf32> -> vector<8x1xf32>
    %150 = vector.broadcast %149 : vector<8x1xf32> to vector<8x8xf32>
    %151 = arith.mulf %146, %150 : vector<8x8xf32>
    %c0_84 = arith.constant 0 : index
    %c0_85 = arith.constant 0 : index
    %152 = vector.load %arg24[%c0_84, %c0_85] : memref<8x8xf32, #tpu.memory_space<vmem>>, vector<8x8xf32>
    tpu.vector_store %arg24[%c0_84, %c0_85], %151 {strides = array<i32>} : memref<8x8xf32, #tpu.memory_space<vmem>>, vector<8x8xf32>,
    %153 = vector.shape_cast %151 : vector<8x8xf32> to vector<8x8x1xf32>
    %154 = vector.broadcast %153 : vector<8x8x1xf32> to vector<8x8x32xf32>
    %155 = arith.mulf %154, %126 : vector<8x8x32xf32>
    %cst_86 = arith.constant dense<0.000000e+00> : vector<8x32xf32>
    %156 = vector.multi_reduction <add>, %155, %cst_86 [1] : vector<8x8x32xf32> to vector<8x32xf32>
    %c0_87 = arith.constant 0 : index
    %c0_88 = arith.constant 0 : index
    %157 = vector.load %arg16[%c0_87, %c0_88] : memref<32x32xf32, #tpu.memory_space<vmem>>, vector<32x32xf32>
    %cst_89 = arith.constant dense<0.000000e+00> : vector<8x32xf32>
    %158 = tpu.matmul %118, %157, %cst_89 {dimension_numbers = #tpu.dot_dimension_numbers<[1], [0], [0], [1], [0, 0, 1, 1], [], []>} : vector<8x32xf32>, vector<32x32xf32>, vector<8x32xf32> -> vector<8x32xf32>
    %c0_90 = arith.constant 0 : index
    %c0_91 = arith.constant 0 : index
    %159 = vector.load %arg17[%c0_90, %c0_91] : memref<32x32xf32, #tpu.memory_space<vmem>>, vector<32x32xf32>
    %cst_92 = arith.constant dense<0.000000e+00> : vector<8x32xf32>
    %160 = tpu.matmul %156, %159, %cst_92 {dimension_numbers = #tpu.dot_dimension_numbers<[1], [0], [0], [1], [0, 0, 1, 1], [], []>} : vector<8x32xf32>, vector<32x32xf32>, vector<8x32xf32> -> vector<8x32xf32>
    %161 = arith.addf %158, %160 : vector<8x32xf32>
    %c0_93 = arith.constant 0 : index
    %c0_94 = arith.constant 0 : index
    %162 = vector.load %arg18[%c0_93, %c0_94] : memref<16x32xf32, #tpu.memory_space<vmem>>, vector<16x32xf32>
    %cst_95 = arith.constant dense<0.000000e+00> : vector<8x32xf32>
    %163 = tpu.matmul %125, %162, %cst_95 {dimension_numbers = #tpu.dot_dimension_numbers<[1], [0], [0], [1], [0, 0, 1, 1], [], []>} : vector<8x16xf32>, vector<16x32xf32>, vector<8x32xf32> -> vector<8x32xf32>
    %164 = arith.addf %161, %163 : vector<8x32xf32>
    %c0_96 = arith.constant 0 : index
    %c0_97 = arith.constant 0 : index
    %165 = vector.load %arg19[%c0_96, %c0_97] : memref<1x32xf32, #tpu.memory_space<vmem>>, vector<1x32xf32>
    %166 = vector.broadcast %165 : vector<1x32xf32> to vector<8x32xf32>
    %167 = arith.addf %164, %166 : vector<8x32xf32>
    %168 = math.tanh %167 : vector<8x32xf32>
    %c0_98 = arith.constant 0 : index
    %c0_99 = arith.constant 0 : index
    %169 = vector.load %arg20[%c0_98, %c0_99] : memref<32x128xf32, #tpu.memory_space<vmem>>, vector<32x128xf32>
    %cst_100 = arith.constant dense<0.000000e+00> : vector<8x128xf32>
    %170 = tpu.matmul %168, %169, %cst_100 {dimension_numbers = #tpu.dot_dimension_numbers<[1], [0], [0], [1], [0, 0, 1, 1], [], []>} : vector<8x32xf32>, vector<32x128xf32>, vector<8x128xf32> -> vector<8x128xf32>
    %c0_101 = arith.constant 0 : index
    %c0_102 = arith.constant 0 : index
    %171 = vector.load %arg21[%c0_101, %c0_102] : memref<1x128xf32, #tpu.memory_space<vmem>>, vector<1x128xf32>
    %172 = vector.broadcast %171 : vector<1x128xf32> to vector<8x128xf32>
    %173 = arith.addf %170, %172 : vector<8x128xf32>
    %c0_103 = arith.constant 0 : index
    %c0_104 = arith.constant 0 : index
    %174 = vector.load %arg25[%c0_103, %c0_104] : memref<8x128xf32, #tpu.memory_space<vmem>>, vector<8x128xf32>
    tpu.vector_store %arg25[%c0_103, %c0_104], %173 {strides = array<i32>} : memref<8x128xf32, #tpu.memory_space<vmem>>, vector<8x128xf32>,
    return
  }
}

</mosaic_0001>

<bundles_post_ra>
// kernel: decoder_forward.1
= control target key start
LH: loop header
LB: loop body
LE: loop exit
PB: predicated region body
PF: predicated region fallthrough
CT: control target
= control target key end

     0   :  { %s2806_s0 = inlined_call_operand.vmem [shape: f32[8,32], index: 0, kind: input, shape index: {}]   ;;  %s2807_s1 = inlined_call_operand.vmem [shape: f32[8,16], index: 1, kind: input, shape index: {}]   ;;  %s2808_s2 = inlined_call_operand.vmem [shape: f32[8,8,32], index: 2, kind: input, shape index: {}]   ;;  %s2809_s3 = inlined_call_operand.vmem [shape: f32[4,8,32], index: 3, kind: input, shape index: {}, may-alias: {3,22}]   ;;  %s2810_s4 = inlined_call_operand.vmem [shape: f32[4,8,32], index: 4, kind: input, shape index: {}, may-alias: {4,23}]   ;;  %s2811_s5 = inlined_call_operand.vmem [shape: f32[64,128], index: 5, kind: input, shape index: {}]   ;;  %s2812_s6 = inlined_call_operand.vmem [shape: f32[64,128], index: 6, kind: input, shape index: {}]   ;;  %s2813_s7 = inlined_call_operand.vmem [shape: f32[64,128], index: 7, kind: input, shape index: {}]   ;;  %s2814_s8 = inlined_call_operand.vmem [shape: f32[64,128], index: 8, kind: input, shape index: {}]   ;;  %s2815_s9 = inlined_call_operand.hbm [shape: f32[1,128], index: 9, kind: input, shape index: {}]   ;;  %s2816_s10 = inlined_call_operand.hbm [shape: f32[1,128], index: 10, kind: input, shape index: {}]   ;;  %s2817_s11 = inlined_call_operand.hbm [shape: f32[1,128], index: 11, kind: input, shape index: {}]   ;;  %s2818_s12 = inlined_call_operand.hbm [shape: f32[1,128], index: 12, kind: input, shape index: {}]   ;;  %s2819_s13 = inlined_call_operand.hbm [shape: f32[1,32], index: 13, kind: input, shape index: {}]   ;;  %s2820_s14 = inlined_call_operand.hbm [shape: f32[1,32], index: 14, kind: input, shape index: {}]   ;;  %s2821_s15 = inlined_call_operand.<no memory space> [shape: f32[1,1], index: 15, kind: input, shape index: {}]   ;;  %s2822_s16 = inlined_call_operand.vmem [shape: f32[32,32], index: 16, kind: input, shape index: {}]   ;;  %s2823_s17 = inlined_call_operand.vmem [shape: f32[32,32], index: 17, kind: input, shape index: {}]   ;;  %s2824_s18 = inlined_call_operand.hbm [shape: f32[16,32], index: 18, kind: input, shape index: {}]   ;;  %s2825_s19 = inlined_call_operand.hbm [shape: f32[1,32], index: 19, kind: input, shape index: {}]   ;;  %s2826_s20 = inlined_call_operand.hbm [shape: f32[32,128], index: 20, kind: input, shape index: {}]   ;;  %s2827_s21 = inlined_call_operand.hbm [shape: f32[1,128], index: 21, kind: input, shape index: {}]   ;;  %s2828_s22 = inlined_call_operand.vmem [shape: f32[4,8,32], index: 22, kind: output, shape index: {0}, may-alias: {3,22}]   ;;  %s2829_s23 = inlined_call_operand.vmem [shape: f32[4,8,32], index: 23, kind: output, shape index: {1}, may-alias: {4,23}]   ;;  %s2830_s24 = inlined_call_operand.vmem [shape: f32[8,8], index: 24, kind: output, shape index: {2}]   ;;  %s2831_s25 = inlined_call_operand.vmem [shape: f32[8,128], index: 25, kind: output, shape index: {3}]  }
   0x1   :  { %2839 = sst [smem:[#allocation25_spill]] %s2806_s0  ;;  %v31_v0 = vstv %s2821_s15 }
   0x2   :  { %2840 = sst [smem:[#allocation26_spill]] %s2807_s1  ;;  %32 = vst [vmem:[#allocation2] sm:$0x1] %v31_v0 }
   0x3   :  { %2841 = sst [smem:[#allocation27_spill]] %s2808_s2 }
   0x4   :  { %2842 = sst [smem:[#allocation28_spill]] %s2809_s3 }
   0x5   :  { %2843 = sst [smem:[#allocation29_spill]] %s2810_s4 }
   0x6   :  { %2844 = sst [smem:[#allocation30_spill]] %s2811_s5 }
   0x7   :  { %2845 = sst [smem:[#allocation31_spill]] %s2812_s6 }
   0x8   :  { %2846 = sst [smem:[#allocation32_spill]] %s2813_s7 }
   0x9   :  { %2847 = sst [smem:[#allocation33_spill]] %s2814_s8 }
   0xa   :  { %2848 = sst [smem:[#allocation34_spill]] %s2815_s9 }
   0xb   :  { %33 = vsyncpa [#allocation4], 0 }
   0xc   :  { %34 = vsyncpa [#allocation6], 0 }
   0xd   :  { %35 = vsyncpa [#allocation9], 0 }
   0xe   :  { %36 = vsyncpa [#allocation12], 0 }
   0xf   :  { %37 = vsyncpa [#allocation15], 0 }
  0x10   :  { %38 = vsyncpa [#allocation18], 0  ;;  %s2136_s6 = smov [#allocation5]   ;;  %s2137_s7 = smov [#allocation8]  }
  0x11   :  { %s73_s30 = sshll.u32 %s2136_s6, 4  ;;  %s93_s3 = sshll.u32 %s2137_s7, 4  ;;  %s74_s30 = int_to_ptr.vmem [resolvable:$true] %s73_s30  ;;  %s94_s3 = int_to_ptr.vmem [resolvable:$true] %s93_s3 }
  0x12   :  { %s1932_s26 = scalar_lea.vmem %s74_s30, 16  ;;  %s1936_s1 = scalar_lea.vmem %s74_s30, 32 }
  0x13   :  { %p1933_p0 = scmp.ne.s32.totalorder %s74_s30, %s1932_s26  ;;  %p1937_p1 = scmp.lt.s32.totalorder %s74_s30, %s74_s30 }
  0x14   :  { %p1938_p2 = scmp.lt.s32.totalorder %s1936_s1, %s1932_s26 }
  0x16   :  { %p1939_p3 = por %p1938_p2, %p1937_p1 }
  0x18   :  { %p1940_p4 = pnand %p1939_p3, %p1933_p0 }
  0x1a   :  { %1943 = shalt.err (!%p1940_p4)
}
  0x1b   :  { %76 = dma.hbm_to_vmem [thread:$0]  %s2816_s10, 16, %s74_s30, [#allocation6]  }
  0x1c   :  { %s1952_s27 = scalar_lea.vmem %s94_s3, 16  ;;  %s1956_s4 = scalar_lea.vmem %s94_s3, 32 }
  0x1d   :  { %p1953_p5 = scmp.ne.s32.totalorder %s94_s3, %s1952_s27  ;;  %p1957_p6 = scmp.lt.s32.totalorder %s94_s3, %s94_s3 }
  0x1e   :  { %p1958_p7 = scmp.lt.s32.totalorder %s1956_s4, %s1952_s27 }
  0x20   :  { %p1959_p8 = por %p1958_p7, %p1957_p6 }
  0x22   :  { %p1960_p9 = pnand %p1959_p8, %p1953_p5 }
  0x24   :  { %1963 = shalt.err (!%p1960_p9)
}
  0x25   :  { %96 = dma.hbm_to_vmem [thread:$0]  %s2818_s12, 16, %s94_s3, [#allocation9]  }
  0x26   :  { %s2138_s5 = smov [#allocation11]   ;;  %s2139_s29 = smov [#allocation14]  }
  0x27   :  { %s113_s0 = sshll.u32 %s2138_s5, 4  ;;  %s141_s2 = sshll.u32 %s2139_s29, 4  ;;  %s114_s0 = int_to_ptr.vmem [resolvable:$true] %s113_s0  ;;  %s142_s2 = int_to_ptr.vmem [resolvable:$true] %s141_s2 }
  0x28   :  { %s1972_s6 = scalar_lea.vmem %s114_s0, 16  ;;  %s1976_s10 = scalar_lea.vmem %s114_s0, 32 }
  0x29   :  { %p1973_p10 = scmp.ne.s32.totalorder %s114_s0, %s1972_s6  ;;  %p1977_p11 = scmp.lt.s32.totalorder %s114_s0, %s114_s0 }
  0x2a   :  { %p1978_p12 = scmp.lt.s32.totalorder %s1976_s10, %s1972_s6 }
  0x2c   :  { %p1979_p13 = por %p1978_p12, %p1977_p11 }
  0x2e   :  { %p1980_p0 = pnand %p1979_p13, %p1973_p10 }
  0x30   :  { %1983 = shalt.err (!%p1980_p0)
}
  0x31   :  { %116 = dma.hbm_to_vmem [thread:$0]  %s2820_s14, 16, %s114_s0, [#allocation12]  }
  0x32   :  { %s1992_s26 = scalar_lea.vmem %s142_s2, 16  ;;  %s1996_s12 = scalar_lea.vmem %s142_s2, 32 }
  0x33   :  { %p1993_p1 = scmp.ne.s32.totalorder %s142_s2, %s1992_s26  ;;  %p1997_p2 = scmp.lt.s32.totalorder %s142_s2, %s142_s2 }
  0x34   :  { %p1998_p3 = scmp.lt.s32.totalorder %s1996_s12, %s1992_s26 }
  0x36   :  { %p1999_p4 = por %p1998_p3, %p1997_p2 }
  0x38   :  { %p2000_p5 = pnand %p1999_p4, %p1993_p1 }
  0x3a   :  { %2003 = shalt.err (!%p2000_p5)
}
  0x3b   :  { %144 = dma.hbm_to_vmem [thread:$0]  %s2825_s19, 16, %s142_s2, [#allocation15]  }
  0x3c   :  { %s2140_s15 = smov [#allocation3]   ;;  %s2141_s27 = smov [#allocation7]  }
  0x3d   :  { %s63_s8 = sshll.u32 %s2140_s15, 4  ;;  %s83_s4 = sshll.u32 %s2141_s27, 4  ;;  %s64_s8 = int_to_ptr.vmem [resolvable:$true] %s63_s8  ;;  %s84_s4 = int_to_ptr.vmem [resolvable:$true] %s83_s4 }
  0x3e   :  { %s2012_s28 = scalar_lea.vmem %s64_s8, 16  ;;  %s2016_s14 = scalar_lea.vmem %s64_s8, 32 }
  0x3f   :  { %p2013_p6 = scmp.ne.s32.totalorder %s64_s8, %s2012_s28  ;;  %p2017_p7 = scmp.lt.s32.totalorder %s64_s8, %s64_s8 }
  0x40   :  { %p2018_p8 = scmp.lt.s32.totalorder %s2016_s14, %s2012_s28 }
  0x42   :  { %p2019_p9 = por %p2018_p8, %p2017_p7 }
  0x44   :  { %p2020_p10 = pnand %p2019_p9, %p2013_p6 }
  0x46   :  { %2023 = shalt.err (!%p2020_p10)
}
  0x47   :  { %s2849_s0 = sld [smem:[#allocation34_spill]]  ;;  %s2032_s29 = scalar_lea.vmem %s84_s4, 16 }
  0x48   :  { %p2033_p11 = scmp.ne.s32.totalorder %s84_s4, %s2032_s29  ;;  %s2036_s19 = scalar_lea.vmem %s84_s4, 32 }
  0x49   :  { %p2037_p12 = scmp.lt.s32.totalorder %s84_s4, %s84_s4  ;;  %p2038_p13 = scmp.lt.s32.totalorder %s2036_s19, %s2032_s29 }
  0x4b   :  { %p2039_p0 = por %p2038_p13, %p2037_p12 }
  0x4d   :  { %66 = dma.hbm_to_vmem [thread:$0]  %s2849_s0, 16, %s64_s8, [#allocation4]  }
  0x4e   :  { %p2040_p1 = pnand %p2039_p0, %p2033_p11 }
  0x50   :  { %2043 = shalt.err (!%p2040_p1)
}
  0x51   :  { %86 = dma.hbm_to_vmem [thread:$0]  %s2817_s11, 16, %s84_s4, [#allocation6]  }
  0x52   :  { %s2142_s10 = smov [#allocation10]   ;;  %s2143_s7 = smov [#allocation13]  }
  0x53   :  { %s103_s30 = sshll.u32 %s2142_s10, 4  ;;  %s128_s26 = sshll.u32 %s2143_s7, 4  ;;  %s104_s30 = int_to_ptr.vmem [resolvable:$true] %s103_s30  ;;  %s129_s26 = int_to_ptr.vmem [resolvable:$true] %s128_s26 }
  0x54   :  { %s2052_s12 = scalar_lea.vmem %s104_s30, 16  ;;  %s2056_s3 = scalar_lea.vmem %s104_s30, 32 }
  0x55   :  { %p2053_p2 = scmp.ne.s32.totalorder %s104_s30, %s2052_s12  ;;  %p2057_p3 = scmp.lt.s32.totalorder %s104_s30, %s104_s30 }
  0x56   :  { %p2058_p4 = scmp.lt.s32.totalorder %s2056_s3, %s2052_s12 }
  0x58   :  { %p2059_p5 = por %p2058_p4, %p2057_p3 }
  0x5a   :  { %p2060_p6 = pnand %p2059_p5, %p2053_p2 }
  0x5c   :  { %2063 = shalt.err (!%p2060_p6)
}
  0x5d   :  { %106 = dma.hbm_to_vmem [thread:$0]  %s2819_s13, 16, %s104_s30, [#allocation9]  }
  0x5e   :  { %s2072_s8 = scalar_lea.vmem %s129_s26, 256  ;;  %p2077_p8 = scmp.lt.s32.totalorder %s129_s26, %s129_s26 }
  0x5f   :  { %p2073_p7 = scmp.ne.s32.totalorder %s129_s26, %s2072_s8  ;;  %p2078_p9 = scmp.lt.s32.totalorder %s2072_s8, %s2072_s8 }
  0x61   :  { %p2079_p10 = por %p2078_p9, %p2077_p8 }
  0x63   :  { %p2080_p11 = pnand %p2079_p10, %p2073_p7 }
  0x65   :  { %2083 = shalt.err (!%p2080_p11)
}
  0x66   :  { %s2144_s11 = smov 128   ;;  %s2145_s27 = smov 8  }
  0x67   :  { %134 = dma.hbm_to_vmem [thread:$0]  %s2824_s18, 256, %s129_s26, [#allocation12], %s2144_s11, %s2144_s11, %s2145_s27  }
  0x68   :  { %s2146_s14 = smov [#allocation16]   ;;  %s2147_s5 = smov [#allocation17]  }
  0x69   :  { %s150_s9 = sshll.u32 %s2146_s14, 4  ;;  %s163_s0 = sshll.u32 %s2147_s5, 4  ;;  %s151_s9 = int_to_ptr.vmem [resolvable:$true] %s150_s9  ;;  %s164_s0 = int_to_ptr.vmem [resolvable:$true] %s163_s0 }
  0x6a   :  { %s2092_s13 = scalar_lea.vmem %s151_s9, 512  ;;  %p2097_p13 = scmp.lt.s32.totalorder %s151_s9, %s151_s9 }
  0x6b   :  { %p2093_p12 = scmp.ne.s32.totalorder %s151_s9, %s2092_s13  ;;  %p2098_p0 = scmp.lt.s32.totalorder %s2092_s13, %s2092_s13 }
  0x6d   :  { %p2099_p1 = por %p2098_p0, %p2097_p13 }
  0x6f   :  { %p2100_p2 = pnand %p2099_p1, %p2093_p12 }
  0x71   :  { %2103 = shalt.err (!%p2100_p2)
}
  0x72   :  { %156 = dma.hbm_to_vmem [thread:$0]  %s2826_s20, 512, %s151_s9, [#allocation15], %s2144_s11, %s2144_s11, %s2145_s27  }
  0x73   :  { %s2112_s2 = scalar_lea.vmem %s164_s0, 16  ;;  %s2116_s18 = scalar_lea.vmem %s164_s0, 32 }
  0x74   :  { %p2113_p3 = scmp.ne.s32.totalorder %s164_s0, %s2112_s2  ;;  %p2117_p4 = scmp.lt.s32.totalorder %s164_s0, %s164_s0 }
  0x75   :  { %p2118_p5 = scmp.lt.s32.totalorder %s2116_s18, %s2112_s2 }
  0x77   :  { %p2119_p6 = por %p2118_p5, %p2117_p4 }
  0x79   :  { %p2120_p7 = pnand %p2119_p6, %p2113_p3 }
  0x7b   :  { %2123 = shalt.err (!%p2120_p7)
}
  0x7c   :  { %166 = dma.hbm_to_vmem [thread:$0]  %s2827_s21, 16, %s164_s0, [#allocation18]  }
  0x7d   :  { %2124 = dma.done.wait [#allocation4], 16  }
  0x7e   :  { %2125 = vsyncadd [#allocation4], 4294967280 }
  0x7f   :  { %2126 = dma.done.wait [#allocation6], 32  }
  0x80   :  { %2127 = vsyncadd [#allocation6], 4294967264 }
  0x81   :  { %2128 = dma.done.wait [#allocation9], 32  }
  0x82   :  { %2129 = vsyncadd [#allocation9], 4294967264 }
  0x83   :  { %2130 = dma.done.wait [#allocation12], 272  }
  0x84   :  { %2131 = vsyncadd [#allocation12], 4294967024 }
  0x85   :  { %2132 = dma.done.wait [#allocation15], 528  }
  0x86   :  { %2133 = vsyncadd [#allocation15], 4294966768 }
  0x87   :  { %2134 = dma.done.wait [#allocation18], 16  }
  0x88   :  { %2135 = vsyncadd [#allocation18], 4294967280  ;;  %v2148_v1 = vmov 0.0   ;;  %vm2149_vm0 = vmmov 0   ;;  %s2850_s30 = sld [smem:[#allocation28_spill]]  ;;  %s2150_s15 = smov 32  }
  0x89   :  { %1736 = vmatprep.subr.mxu0 %v2148_v1  ;;  %1752 = vmatprep.mubr.msk.f32.mxu0 %vm2149_vm0, %v2148_v1  ;;  %s2851_s12 = sld [smem:[#allocation30_spill]]  ;;  %vm204_vm1 = vcmask 261120   ;;  %vm221_vm2 = vcmask 523264   ;;  %v1649_v15 = vld [vmem:[#allocation3] ss:$0 sm:$0xff]  ;;  %s2151_s7 = smov 64  }
  0x8a   :  { %1755 = vmatprep.subr.mxu1 %v2148_v1  ;;  %1771 = vmatprep.mubr.msk.f32.mxu1 %vm2149_vm0, %v2148_v1  ;;  %s2852_s28 = sld [smem:[#allocation29_spill]]  ;;  %v1654_v46 = vld [vmem:[#allocation5] ss:$0 sm:$0xff]  ;;  %vm935_vm3 = vcmask 1041409   ;;  %vm937_vm4 = vcmask 1042434   ;;  %vm939_vm5 = vcmask 1043459  }
  0x8b   :  { %s2853_s21 = sld [smem:[#allocation25_spill]]  ;;  %vm941_vm6 = vcmask 1044484   ;;  %vm943_vm7 = vcmask 1045509   ;;  %vm945_vm8 = vcmask 1046534   ;;  %vm947_vm9 = vcmask 1047559  }
  0x8c   :  { %s2854_s3 = sld [smem:[#allocation31_spill]]  ;;  %vm950_vm10 = vcmask 64512   ;;  %vm1458_vm11 = vcmask 130048  }
  0x8d   :  { %s2855_s8 = sld [smem:[#allocation32_spill]] }
  0x8e   :  { %v198_v2 = vld [vmem:[%s2850_s30] sm:$0xff]  ;;  %v1652_v38 = vld [vmem:[%s2850_s30 + $0x8] sm:$0xff]  ;;  %s2856_s27 = sld [smem:[#allocation33_spill]] }
  0x8f   :  { %v213_v3 = vld [vmem:[%s2851_s12 + $0x38] sm:$0xff]  ;;  %v212_v4 = vld [vmem:[%s2851_s12 + $0x30] sm:$0xff]  ;;  %201 = vrot.lane.b32.xlu0 %v198_v2, %s2150_s15  ;;  %v211_v5 = vld [vmem:[%s2851_s12 + $0x28] sm:$0xff]  ;;  %s2857_s4 = sld [smem:[#allocation27_spill]] }
  0x90   :  { %1737 = vmatpush3.msra.mxu0 %v213_v3  ;;  %v199_v6 = vld [vmem:[%s2852_s28] sm:$0xff]  ;;  %v209_v8 = vld [vmem:[%s2851_s12 + $0x18] sm:$0xff]  ;;  %v208_v9 = vld [vmem:[%s2851_s12 + $0x10] sm:$0xff] }
  0x91   :  { %1738 = vmatprep.subr.mxu0 %v2148_v1  ;;  %v210_v7 = vld [vmem:[%s2851_s12 + $0x20] sm:$0xff]  ;;  %303 = vrot.lane.b32.xlu1 %v199_v6, %s2150_s15  ;;  %v207_v10 = vld [vmem:[%s2851_s12 + $0x8] sm:$0xff] }
  0x92   :  { %1739 = vmatpush3.msra.mxu0 %v212_v4  ;;  %v206_v11 = vld [vmem:[%s2851_s12] sm:$0xff]  ;;  %v349_v30 = vld [vmem:[%s2854_s3 + $0x38] sm:$0xff]  ;;  %v348_v31 = vld [vmem:[%s2854_s3 + $0x30] sm:$0xff]  ;;  %s2858_s12 = sld [smem:[#allocation26_spill]] }
  0x93   :  { %1740 = vmatprep.subr.mxu0 %v2148_v1  ;;  %v197_v12 = vld [vmem:[%s2853_s21] sm:$0xff]  ;;  %1756 = vmatpush3.msra.mxu1 %v349_v30  ;;  %v347_v32 = vld [vmem:[%s2854_s3 + $0x28] sm:$0xff]  ;;  %v345_v34 = vld [vmem:[%s2854_s3 + $0x18] sm:$0xff] }
  0x94   :  { %1741 = vmatpush3.msra.mxu0 %v211_v5  ;;  %1757 = vmatprep.subr.mxu1 %v2148_v1  ;;  %v346_v33 = vld [vmem:[%s2854_s3 + $0x20] sm:$0xff]  ;;  %v344_v35 = vld [vmem:[%s2854_s3 + $0x10] sm:$0xff]  ;;  %v343_v37 = vld [vmem:[%s2854_s3 + $0x8] sm:$0xff] }
  0x95   :  { %1742 = vmatprep.subr.mxu0 %v2148_v1  ;;  %1758 = vmatpush3.msra.mxu1 %v348_v31  ;;  %v342_v39 = vld [vmem:[%s2854_s3] sm:$0xff]  ;;  %v1653_v40 = vld [vmem:[%s2852_s28 + $0x8] sm:$0xff]  ;;  %v486_v61 = vld [vmem:[%s2855_s8 + $0x38] sm:$0xff] }
  0x96   :  { %1743 = vmatpush3.msra.mxu0 %v210_v7  ;;  %1759 = vmatprep.subr.mxu1 %v2148_v1  ;;  %v485_v62 = vld [vmem:[%s2855_s8 + $0x30] sm:$0xff]  ;;  %v484_v63 = vld [vmem:[%s2855_s8 + $0x28] sm:$0xff]  ;;  %v483_v0 = vld [vmem:[%s2855_s8 + $0x20] sm:$0xff] }
  0x97   :  { %1744 = vmatprep.subr.mxu0 %v2148_v1  ;;  %1760 = vmatpush3.msra.mxu1 %v347_v32  ;;  %v482_v2 = vld [vmem:[%s2855_s8 + $0x18] sm:$0xff]  ;;  %v481_v3 = vld [vmem:[%s2855_s8 + $0x10] sm:$0xff]  ;;  %v480_v5 = vld [vmem:[%s2855_s8 + $0x8] sm:$0xff] }
  0x98   :  { %1745 = vmatpush3.msra.mxu0 %v209_v8  ;;  %1761 = vmatprep.subr.mxu1 %v2148_v1  ;;  %v479_v7 = vld [vmem:[%s2855_s8] sm:$0xff]  ;;  %v1660_v8 = vld [vmem:[%s2852_s28 + $0x10] sm:$0xff]  ;;  %v623_v30 = vld [vmem:[%s2856_s27 + $0x38] sm:$0xff] }
  0x99   :  { %1746 = vmatprep.subr.mxu0 %v2148_v1  ;;  %1762 = vmatpush3.msra.mxu1 %v346_v33  ;;  %v622_v31 = vld [vmem:[%s2856_s27 + $0x30] sm:$0xff]  ;;  %v621_v32 = vld [vmem:[%s2856_s27 + $0x28] sm:$0xff]  ;;  %v620_v33 = vld [vmem:[%s2856_s27 + $0x20] sm:$0xff] }
  0x9a   :  { %1747 = vmatpush3.msra.mxu0 %v208_v9  ;;  %1763 = vmatprep.subr.mxu1 %v2148_v1 }
  0x9b   :  { %1748 = vmatprep.subr.mxu0 %v2148_v1  ;;  %1764 = vmatpush3.msra.mxu1 %v345_v34  ;;  %v619_v34 = vld [vmem:[%s2856_s27 + $0x18] sm:$0xff] }
  0x9c   :  { %1749 = vmatpush3.msra.mxu0 %v207_v10  ;;  %1765 = vmatprep.subr.mxu1 %v2148_v1 }
  0x9d   :  { %1750 = vmatprep.subr.mxu0 %v2148_v1  ;;  %1766 = vmatpush3.msra.mxu1 %v344_v35  ;;  %v618_v35 = vld [vmem:[%s2856_s27 + $0x10] sm:$0xff] }
  0x9e   :  { %1751 = vmatpush3.msra.mxu0 %v206_v11  ;;  %1767 = vmatprep.subr.mxu1 %v2148_v1 }
  0x9f   :  { %1774 = vmatprep.subr.mxu0 %v2148_v1  ;;  %1768 = vmatpush3.msra.mxu1 %v343_v37  ;;  %v617_v37 = vld [vmem:[%s2856_s27 + $0x8] sm:$0xff] }
  0xa0   :  { %1769 = vmatprep.subr.mxu1 %v2148_v1 }
  0xa1   :  { %1770 = vmatpush3.msra.mxu1 %v342_v39  ;;  %v616_v39 = vld [vmem:[%s2856_s27] sm:$0xff] }
  0xa2   :  { %1793 = vmatprep.subr.mxu1 %v2148_v1 }
 0x101   :  { %v202_v13 = vpop.permute.xlu0 %201 }
 0x102   :  { %v205_v14 = vsel %vm204_vm1, %v197_v12, %v202_v13 }
 0x103   :  { %1753 = vmatmul.mubr.msk.f32.vlgmr.msra.gmra.mxu0 %vm221_vm2, %v205_v14  ;;  %v304_v26 = vpop.permute.xlu1 %303  ;;  %v1661_v14 = vld [vmem:[#allocation7] ss:$0 sm:$0xff] }
 0x104   :  { %1790 = vmatprep.mubr.msk.f32.mxu0 %vm2149_vm0, %v2148_v1  ;;  %1775 = vmatpush3.msra.mxu0 %v486_v61 }
 0x105   :  { %1776 = vmatprep.subr.mxu0 %v2148_v1 }
 0x106   :  { %1777 = vmatpush3.msra.mxu0 %v485_v62 }
 0x107   :  { %1778 = vmatprep.subr.mxu0 %v2148_v1 }
 0x108   :  { %1779 = vmatpush3.msra.mxu0 %v484_v63 }
 0x109   :  { %1780 = vmatprep.subr.mxu0 %v2148_v1 }
 0x10a   :  { %1781 = vmatpush3.msra.mxu0 %v483_v0 }
 0x10b   :  { %1782 = vmatprep.subr.mxu0 %v2148_v1 }
 0x10c   :  { %1783 = vmatpush3.msra.mxu0 %v482_v2 }
 0x10d   :  { %1784 = vmatprep.subr.mxu0 %v2148_v1 }
 0x10e   :  { %1785 = vmatpush3.msra.mxu0 %v481_v3 }
 0x10f   :  { %1786 = vmatprep.subr.mxu0 %v2148_v1 }
 0x110   :  { %1787 = vmatpush3.msra.mxu0 %v480_v5  ;;  %v2549_v5 = vld [vmem:[%s2857_s4] sm:$0xff] }
 0x111   :  { %1788 = vmatprep.subr.mxu0 %v2148_v1 }
 0x112   :  { %1789 = vmatpush3.msra.mxu0 %v479_v7 }
 0x113   :  { %1812 = vmatprep.subr.mxu0 %v2148_v1 }
 0x1c3   :  { %v291_v16 = vpop.f32.mrf.mxu0 }
 0x1c4   :  { %v292_v17 = vadd.f32 %v1649_v15, %v291_v16 }
 0x1c5   :  { %v1754_v18 = vpop.f32.mrf.mxu0 }
 0x1c6   :  { %1872 = vtanh.f32 %v292_v17  ;;  %v1651_v20 = vmul.f32 -1.442695, %v292_v17 }
 0x1c8   :  { %1874 = vpow2.f32 %v1651_v20 }
 0x1d3   :  { %v1873_v19 = vpop.eup %1872 }
 0x1d4   :  { %308 = vrot.lane.b32.xlu0 %v1873_v19, %s2151_s7 }
 0x1d5   :  { %v1875_v21 = vpop.eup %1874 }
 0x1d6   :  { %v298_v22 = vadd.f32 1.0, %v1875_v21 }
 0x1d8   :  { %1876 = vrcp.f32 %v298_v22 }
 0x1e5   :  { %v1877_v23 = vpop.eup %1876 }
 0x1e6   :  { %v306_v27 = vmul.f32 %v1877_v23, %v304_v26 }
 0x246   :  { %v309_v24 = vpop.permute.xlu0 %308 }
 0x247   :  { %v311_v25 = vmul.f32 %v1877_v23, %v309_v24 }
 0x249   :  { %313 = vrot.lane.b32.xlu1 %v311_v25, %s2150_s15 }
 0x2bb   :  { %v314_v28 = vpop.permute.xlu1 %313 }
 0x2bc   :  { %v2372_v29 = vadd.f32 %v314_v28, %v306_v27 }
 0x2be   :  { %1878 = vtanh.f32 %v2372_v29 }
 0x2cb   :  { %v1879_v36 = vpop.eup %1878 }
 0x2cc   :  { %319 = vrot.lane.b32.xlu0 %v1879_v36, %s2151_s7 }
 0x2d0   :  { %338 = vrot.lane.b32.xlu0 %v1652_v38, %s2150_s15 }
 0x2d4   :  { %438 = vrot.lane.b32.xlu0 %v1653_v40, %s2150_s15  ;;  %v1667_v40 = vld [vmem:[%s2852_s28 + $0x18] sm:$0xff]  ;;  %s2152_s28 = smov 96  }
 0x33e   :  { %v320_v41 = vpop.permute.xlu0 %319 }
 0x33f   :  { %v322_v42 = vmul.f32 %v1877_v23, %v320_v41 }
 0x341   :  { %324 = vrot.lane.b32.xlu1 %v322_v42, %s2150_s15 }
 0x342   :  { %v339_v43 = vpop.permute.xlu0 %338 }
 0x346   :  { %v439_v57 = vpop.permute.xlu0 %438 }
 0x3b3   :  { %v325_v44 = vpop.permute.xlu1 %324 }
 0x3b4   :  { %327 = vst.msk [vmem:[%s2828_s22] sm:$0xff] %vm204_vm1, %v325_v44  ;;  %v341_v45 = vsel %vm204_vm1, %v325_v44, %v339_v43 }
 0x3b5   :  { %1772 = vmatmul.mubr.msk.f32.vlgmr.msra.gmra.mxu1 %vm221_vm2, %v341_v45 }
 0x3b6   :  { %1809 = vmatprep.mubr.msk.f32.mxu1 %vm2149_vm0, %v2148_v1  ;;  %1794 = vmatpush3.msra.mxu1 %v623_v30  ;;  %v2598_v30 = vld [vmem:[%s2857_s4 + $0x38] sm:$0xff] }
 0x3b7   :  { %1795 = vmatprep.subr.mxu1 %v2148_v1 }
 0x3b8   :  { %1796 = vmatpush3.msra.mxu1 %v622_v31 }
 0x3b9   :  { %1797 = vmatprep.subr.mxu1 %v2148_v1 }
 0x3ba   :  { %1798 = vmatpush3.msra.mxu1 %v621_v32 }
 0x3bb   :  { %v1659_v6 = vld [vmem:[%s2850_s30 + $0x10] sm:$0xff]  ;;  %1799 = vmatprep.subr.mxu1 %v2148_v1 }
 0x3bc   :  { %1800 = vmatpush3.msra.mxu1 %v620_v33  ;;  %v2153_v33 = vmov 0  }
 0x3bd   :  { %1801 = vmatprep.subr.mxu1 %v2148_v1  ;;  %1870 = vset.pattern.permute.xlu0 %v2153_v33 }
 0x3be   :  { %1802 = vmatpush3.msra.mxu1 %v619_v34  ;;  %1871 = vset.pattern.permute.xlu1 %v2153_v33 }
 0x3bf   :  { %1803 = vmatprep.subr.mxu1 %v2148_v1 }
 0x3c0   :  { %1804 = vmatpush3.msra.mxu1 %v618_v35  ;;  %v821_v35 = vlaneseq }
 0x3c1   :  { %1805 = vmatprep.subr.mxu1 %v2148_v1 }
 0x3c2   :  { %1806 = vmatpush3.msra.mxu1 %v617_v37  ;;  %v822_v37 = vshrl.u32 %v821_v35, 7 }
 0x3c3   :  { %1807 = vmatprep.subr.mxu1 %v2148_v1 }
 0x3c4   :  { %1808 = vmatpush3.msra.mxu1 %v616_v39 }
 0x3c5   :  { %1823 = vmatprep.subr.mxu1 %v2148_v1 }
 0x475   :  { %v426_v47 = vpop.f32.mrf.mxu1 }
 0x476   :  { %v427_v48 = vadd.f32 %v1654_v46, %v426_v47  ;;  %v1668_v46 = vld [vmem:[#allocation8] ss:$0 sm:$0xff] }
 0x477   :  { %v1773_v49 = vpop.f32.mrf.mxu1 }
 0x478   :  { %1880 = vtanh.f32 %v427_v48  ;;  %v1656_v51 = vmul.f32 -1.442695, %v427_v48 }
 0x47a   :  { %1882 = vpow2.f32 %v1656_v51 }
 0x485   :  { %v1881_v50 = vpop.eup %1880 }
 0x486   :  { %443 = vrot.lane.b32.xlu1 %v1881_v50, %s2151_s7 }
 0x487   :  { %v1883_v52 = vpop.eup %1882 }
 0x488   :  { %v433_v53 = vadd.f32 1.0, %v1883_v52 }
 0x48a   :  { %1884 = vrcp.f32 %v433_v53 }
 0x497   :  { %v1885_v54 = vpop.eup %1884 }
 0x498   :  { %v441_v58 = vmul.f32 %v1885_v54, %v439_v57  ;;  %v1674_v57 = vld [vmem:[#allocation11] ss:$0 sm:$0xff] }
 0x4f8   :  { %v444_v55 = vpop.permute.xlu1 %443 }
 0x4f9   :  { %v446_v56 = vmul.f32 %v1885_v54, %v444_v55 }
 0x4fb   :  { %448 = vrot.lane.b32.xlu1 %v446_v56, %s2150_s15 }
 0x56d   :  { %v449_v59 = vpop.permute.xlu1 %448 }
 0x56e   :  { %v2427_v60 = vadd.f32 %v449_v59, %v441_v58 }
 0x570   :  { %1886 = vtanh.f32 %v2427_v60 }
 0x57d   :  { %v1887_v4 = vpop.eup %1886 }
 0x57e   :  { %454 = vrot.lane.b32.xlu0 %v1887_v4, %s2151_s7 }
 0x582   :  { %475 = vrot.lane.b32.xlu0 %v1659_v6, %s2150_s15  ;;  %v1673_v6 = vld [vmem:[#allocation10] ss:$0 sm:$0xff] }
 0x583   :  { %v760_v7 = vmul.f32 %v1673_v6, %v2549_v5  ;;  %v767_v32 = vmul.f32 %v1673_v6, %v2598_v30 }
 0x585   :  { %v789_v34 = vsel %vm204_vm1, %v767_v32, 0.0 }
 0x586   :  { %575 = vrot.lane.b32.xlu0 %v1660_v8, %s2150_s15  ;;  %v2555_v8 = vld [vmem:[%s2857_s4 + $0x8] sm:$0xff] }
 0x5f0   :  { %v455_v9 = vpop.permute.xlu0 %454 }
 0x5f1   :  { %v457_v10 = vmul.f32 %v1885_v54, %v455_v9  ;;  %v768_v9 = vsel %vm204_vm1, %v760_v7, 0.0 }
 0x5f3   :  { %459 = vrot.lane.b32.xlu1 %v457_v10, %s2150_s15  ;;  %v761_v10 = vmul.f32 %v1673_v6, %v2555_v8 }
 0x5f4   :  { %v476_v11 = vpop.permute.xlu0 %475 }
 0x5f8   :  { %v576_v25 = vpop.permute.xlu0 %575 }
 0x665   :  { %v460_v12 = vpop.permute.xlu1 %459 }
 0x666   :  { %1657 = vst.msk [vmem:[%s2828_s22 + $0x8] sm:$0xff] %vm204_vm1, %v460_v12  ;;  %v478_v13 = vsel %vm204_vm1, %v460_v12, %v476_v11  ;;  %v2562_v11 = vld [vmem:[%s2857_s4 + $0x18] sm:$0xff]  ;;  %v771_v12 = vsel %vm204_vm1, %v761_v10, 0.0  ;;  %v2629_v10 = vsub.s32 5, %v822_v37 }
 0x667   :  { %1791 = vmatmul.mubr.msk.f32.vlgmr.msra.gmra.mxu0 %vm221_vm2, %v478_v13  ;;  %v763_v13 = vmul.f32 %v1673_v6, %v2562_v11 }
 0x668   :  { %1820 = vmatprep.mubr.msk.f32.mxu0 %vm2149_vm0, %v2148_v1 }
 0x66d   :  { %v1666_v38 = vld [vmem:[%s2850_s30 + $0x18] sm:$0xff] }
 0x727   :  { %v563_v15 = vpop.f32.mrf.mxu0 }
 0x728   :  { %v564_v16 = vadd.f32 %v1661_v14, %v563_v15  ;;  %v2569_v14 = vld [vmem:[%s2857_s4 + $0x28] sm:$0xff]  ;;  %v777_v15 = vsel %vm204_vm1, %v763_v13, 0.0 }
 0x729   :  { %v1792_v17 = vpop.f32.mrf.mxu0 }
 0x72a   :  { %1888 = vtanh.f32 %v564_v16  ;;  %v1663_v19 = vmul.f32 -1.442695, %v564_v16  ;;  %v765_v16 = vmul.f32 %v1673_v6, %v2569_v14 }
 0x72c   :  { %1890 = vpow2.f32 %v1663_v19  ;;  %v783_v17 = vsel %vm204_vm1, %v765_v16, 0.0 }
 0x737   :  { %v1889_v18 = vpop.eup %1888 }
 0x738   :  { %580 = vrot.lane.b32.xlu1 %v1889_v18, %s2151_s7  ;;  %v2577_v18 = vld [vmem:[%s2857_s4 + $0x10] sm:$0xff] }
 0x739   :  { %v1891_v20 = vpop.eup %1890  ;;  %v762_v19 = vmul.f32 %v1673_v6, %v2577_v18 }
 0x73a   :  { %v570_v21 = vadd.f32 1.0, %v1891_v20 }
 0x73c   :  { %1892 = vrcp.f32 %v570_v21  ;;  %v2583_v21 = vld [vmem:[%s2857_s4 + $0x20] sm:$0xff] }
 0x749   :  { %v1893_v22 = vpop.eup %1892 }
 0x74a   :  { %v578_v26 = vmul.f32 %v1893_v22, %v576_v25  ;;  %v2591_v25 = vld [vmem:[%s2857_s4 + $0x30] sm:$0xff] }
 0x7aa   :  { %v581_v23 = vpop.permute.xlu1 %580 }
 0x7ab   :  { %v583_v24 = vmul.f32 %v1893_v22, %v581_v23  ;;  %v774_v23 = vsel %vm204_vm1, %v762_v19, 0.0 }
 0x7ad   :  { %585 = vrot.lane.b32.xlu1 %v583_v24, %s2150_s15  ;;  %v764_v24 = vmul.f32 %v1673_v6, %v2583_v21 }
 0x81f   :  { %v586_v27 = vpop.permute.xlu1 %585 }
 0x820   :  { %v2482_v28 = vadd.f32 %v586_v27, %v578_v26  ;;  %v780_v26 = vsel %vm204_vm1, %v764_v24, 0.0  ;;  %v766_v27 = vmul.f32 %v1673_v6, %v2591_v25  ;;  %v2626_v6 = vsub.s32 4, %v822_v37 }
 0x822   :  { %1894 = vtanh.f32 %v2482_v28  ;;  %v786_v31 = vsel %vm204_vm1, %v766_v27, 0.0 }
 0x82f   :  { %v1895_v36 = vpop.eup %1894 }
 0x830   :  { %591 = vrot.lane.b32.xlu0 %v1895_v36, %s2151_s7  ;;  %v1675_v36 = vld [vmem:[#allocation2] ss:$0 sm:$0xff] }
 0x834   :  { %612 = vrot.lane.b32.xlu0 %v1666_v38, %s2150_s15  ;;  %v902_v38 = vand.u32 127, %v821_v35 }
 0x838   :  { %712 = vrot.lane.b32.xlu0 %v1667_v40, %s2150_s15  ;;  %v2603_v40 = vsub.s32 %v902_v38, %v822_v37 }
 0x8a2   :  { %v592_v41 = vpop.permute.xlu0 %591 }
 0x8a3   :  { %v594_v42 = vmul.f32 %v1893_v22, %v592_v41 }
 0x8a5   :  { %596 = vrot.lane.b32.xlu1 %v594_v42, %s2150_s15 }
 0x8a6   :  { %v613_v43 = vpop.permute.xlu0 %612 }
 0x8aa   :  { %v713_v58 = vpop.permute.xlu0 %712 }
 0x917   :  { %v597_v44 = vpop.permute.xlu1 %596 }
 0x918   :  { %1664 = vst.msk [vmem:[%s2828_s22 + $0x10] sm:$0xff] %vm204_vm1, %v597_v44  ;;  %v615_v45 = vsel %vm204_vm1, %v597_v44, %v613_v43 }
 0x919   :  { %1810 = vmatmul.mubr.msk.f32.vlgmr.msra.gmra.mxu1 %vm221_vm2, %v615_v45 }
 0x91a   :  { %1831 = vmatprep.mubr.msk.f32.mxu1 %vm2149_vm0, %v2148_v1 }
 0x9d9   :  { %v700_v47 = vpop.f32.mrf.mxu1 }
 0x9da   :  { %v701_v48 = vadd.f32 %v1668_v46, %v700_v47 }
 0x9db   :  { %v1811_v49 = vpop.f32.mrf.mxu1 }
 0x9dc   :  { %1896 = vtanh.f32 %v701_v48  ;;  %v1670_v51 = vmul.f32 -1.442695, %v701_v48  ;;  %v2605_v49 = vsub.s32 7, %v822_v37 }
 0x9de   :  { %1898 = vpow2.f32 %v1670_v51  ;;  %v2609_v51 = vsub.s32 1, %v822_v37 }
 0x9e9   :  { %v1897_v50 = vpop.eup %1896 }
 0x9ea   :  { %717 = vrot.lane.b32.xlu1 %v1897_v50, %s2151_s7  ;;  %v2607_v50 = vsub.s32 0, %v822_v37 }
 0x9eb   :  { %v1899_v52 = vpop.eup %1898 }
 0x9ec   :  { %v707_v53 = vadd.f32 1.0, %v1899_v52 }
 0x9ee   :  { %1900 = vrcp.f32 %v707_v53 }
 0x9fb   :  { %v1901_v54 = vpop.eup %1900 }
 0x9fc   :  { %v715_v59 = vmul.f32 %v1901_v54, %v713_v58 }
 0xa5c   :  { %v718_v55 = vpop.permute.xlu1 %717 }
 0xa5d   :  { %v720_v56 = vmul.f32 %v1901_v54, %v718_v55 }
 0xa5f   :  { %722 = vrot.lane.b32.xlu1 %v720_v56, %s2150_s15 }
 0xa63   :  { %798 = vrot.lane.b32.xlu1 %v1674_v57, %s2152_s28 }
 0xad1   :  { %v723_v61 = vpop.permute.xlu1 %722 }
 0xad2   :  { %v2538_v62 = vadd.f32 %v723_v61, %v715_v59  ;;  %v2618_v59 = vsub.s32 2, %v822_v37 }
 0xad4   :  { %1902 = vtanh.f32 %v2538_v62 }
 0xad5   :  { %v799_v2 = vpop.permute.xlu1 %798 }
 0xae1   :  { %v1903_v63 = vpop.eup %1902 }
 0xae2   :  { %728 = vrot.lane.b32.xlu0 %v1903_v63, %s2151_s7 }
 0xb54   :  { %v729_v0 = vpop.permute.xlu0 %728 }
 0xb55   :  { %v2542_v3 = vmul.f32 %v1901_v54, %v729_v0  ;;  %v2623_v0 = vsub.s32 3, %v822_v37 }
 0xb57   :  { %v801_v4 = vmul.f32 %v799_v2, %v2542_v3 }
 0xb59   :  { %803 = vrot.lane.b32.xlu0 %v801_v4, %s2150_s15 }
 0xb78   :  { %769 = vadd.xlane.f32.xlu0 %v768_v9 }
 0xb7c   :  { %772 = vadd.xlane.f32.xlu0 %v771_v12 }
 0xb80   :  { %778 = vadd.xlane.f32.xlu0 %v777_v15  ;;  %v2632_v15 = vsub.s32 6, %v822_v37 }
 0xb84   :  { %784 = vadd.xlane.f32.xlu0 %v783_v17 }
 0xbcb   :  { %v804_v20 = vpop.permute.xlu0 %803 }
 0xbcc   :  { %v806_v22 = vsel %vm204_vm1, %v804_v20, 0.0 }
 0xbcd   :  { %807 = vadd.xlane.f32.xlu1 %v806_v22 }
 0xbd1   :  { %775 = vadd.xlane.f32.xlu1 %v774_v23 }
 0xbd5   :  { %781 = vadd.xlane.f32.xlu1 %v780_v26 }
 0xbd9   :  { %787 = vadd.xlane.f32.xlu1 %v786_v31 }
 0xbdd   :  { %790 = vadd.xlane.f32.xlu1 %v789_v34 }
 0xc01   :  { %v770_v42 = vpop.xlane.xlu0 %769 }
 0xc05   :  { %v773_v44 = vpop.xlane.xlu0 %772 }
 0xc09   :  { %v779_v46 = vpop.xlane.xlu0 %778 }
 0xc0d   :  { %v785_v48 = vpop.xlane.xlu0 %784 }
 0xc56   :  { %v808_v39 = vpop.xlane.xlu1 %807 }
 0xc57   :  { %v816_v41 = vadd.f32 %v1675_v36, %v808_v39 }
 0xc59   :  { %819 = vperm.xlu0 %1870, %v816_v41  }
 0xc5a   :  { %v776_v43 = vpop.xlane.xlu1 %775 }
 0xc5e   :  { %v782_v45 = vpop.xlane.xlu1 %781 }
 0xc62   :  { %v788_v47 = vpop.xlane.xlu1 %787 }
 0xc66   :  { %v791_v53 = vpop.xlane.xlu1 %790 }
 0xcd4   :  { %v820_v52 = vpop.permute.xlu0 %819 }
 0xcd5   :  { %v852_v54 = vrot.slane %v820_v52, %v2605_v49  ;;  %v824_v55 = vrot.slane %v820_v52, %v2607_v50  ;;  %v828_v58 = vrot.slane %v820_v52, %v2609_v51  ;;  %v832_v63 = vrot.slane %v820_v52, %v2618_v59 }
 0xcd6   :  { %v836_v4 = vrot.slane %v820_v52, %v2623_v0  ;;  %v840_v9 = vrot.slane %v820_v52, %v2626_v6  ;;  %v844_v13 = vrot.slane %v820_v52, %v2629_v10  ;;  %v848_v17 = vrot.slane %v820_v52, %v2632_v15 }
 0xcd7   :  { %v2613_v56 = vadd.f32 %v852_v54, %v791_v53  ;;  %v2615_v57 = vadd.f32 %v824_v55, %v770_v42  ;;  %v862_v61 = vadd.f32 %v828_v58, %v773_v44  ;;  %v863_v2 = vadd.f32 %v832_v63, %v776_v43 }
 0xcd8   :  { %v864_v7 = vadd.f32 %v836_v4, %v779_v46  ;;  %v865_v12 = vadd.f32 %v840_v9, %v782_v45  ;;  %v866_v16 = vadd.f32 %v844_v13, %v785_v48  ;;  %v867_v19 = vadd.f32 %v848_v17, %v788_v47 }
 0xcd9   :  { %899 = vperm.xlu0 %1870, %v2613_v56   ;;  %878 = vperm.xlu1 %1871, %v2615_v57  }
 0xcdd   :  { %881 = vperm.xlu1 %1871, %v862_v61  }
 0xce1   :  { %884 = vperm.xlu1 %1871, %v863_v2  }
 0xce5   :  { %887 = vperm.xlu1 %1871, %v864_v7  }
 0xce9   :  { %890 = vperm.xlu1 %1871, %v865_v12  }
 0xced   :  { %893 = vperm.xlu1 %1871, %v866_v16  }
 0xcf1   :  { %896 = vperm.xlu1 %1871, %v867_v19  }
 0xd54   :  { %v879_v20 = vpop.permute.xlu1 %878  ;;  %v900_v38 = vpop.permute.xlu0 %899 }
 0xd55   :  { %v906_v32 = vrot.slane %v879_v20, %v2603_v40  ;;  %v934_v45 = vrot.slane %v900_v38, %v2603_v40 }
 0xd58   :  { %v882_v22 = vpop.permute.xlu1 %881 }
 0xd59   :  { %v910_v27 = vrot.slane %v882_v22, %v2603_v40 }
 0xd5b   :  { %v936_v36 = vsel %vm935_vm3, %v910_v27, %v906_v32 }
 0xd5c   :  { %v885_v23 = vpop.permute.xlu1 %884 }
 0xd5d   :  { %v914_v31 = vrot.slane %v885_v23, %v2603_v40 }
 0xd5f   :  { %v938_v39 = vsel %vm937_vm4, %v914_v31, %v936_v36 }
 0xd60   :  { %v888_v24 = vpop.permute.xlu1 %887 }
 0xd61   :  { %v918_v33 = vrot.slane %v888_v24, %v2603_v40 }
 0xd63   :  { %v940_v41 = vsel %vm939_vm5, %v918_v33, %v938_v39 }
 0xd64   :  { %v891_v26 = vpop.permute.xlu1 %890 }
 0xd65   :  { %v922_v35 = vrot.slane %v891_v26, %v2603_v40 }
 0xd67   :  { %v942_v43 = vsel %vm941_vm6, %v922_v35, %v940_v41 }
 0xd68   :  { %v894_v34 = vpop.permute.xlu1 %893 }
 0xd69   :  { %v926_v37 = vrot.slane %v894_v34, %v2603_v40 }
 0xd6b   :  { %v944_v46 = vsel %vm943_vm7, %v926_v37, %v942_v43 }
 0xd6c   :  { %v897_v42 = vpop.permute.xlu1 %896 }
 0xd6d   :  { %v930_v44 = vrot.slane %v897_v42, %v2603_v40 }
 0xd6f   :  { %v946_v47 = vsel %vm945_vm8, %v930_v44, %v944_v46 }
 0xd70   :  { %v948_v48 = vsel %vm947_vm9, %v934_v45, %v946_v47 }
 0xd71   :  { %v951_v52 = vsel %vm950_vm10, %v948_v48, -inf }
 0xd72   :  { %952 = vmax.xlane.f32.xlu1 %v951_v52 }
 0xdfb   :  { %v953_v53 = vpop.xlane.xlu1 %952 }
 0xdfc   :  { %v958_v54 = vrot.slane %v953_v53, %v2607_v50  ;;  %v962_v55 = vrot.slane %v953_v53, %v2609_v51  ;;  %v966_v58 = vrot.slane %v953_v53, %v2618_v59  ;;  %v970_v13 = vrot.slane %v953_v53, %v2623_v0 }
 0xdfd   :  { %v974_v22 = vrot.slane %v953_v53, %v2626_v6  ;;  %v978_v26 = vrot.slane %v953_v53, %v2629_v10  ;;  %v982_v32 = vrot.slane %v953_v53, %v2632_v15 }
 0xdfe   :  { %v995_v63 = vsub.f32 %v2615_v57, %v958_v54  ;;  %v996_v4 = vsub.f32 %v862_v61, %v962_v55  ;;  %v997_v17 = vsub.f32 %v863_v2, %v966_v58  ;;  %v998_v23 = vsub.f32 %v864_v7, %v970_v13 }
 0xdff   :  { %v999_v27 = vsub.f32 %v865_v12, %v974_v22  ;;  %v1000_v57 = vsub.f32 %v866_v16, %v978_v26  ;;  %v986_v2 = vrot.slane %v953_v53, %v2605_v49  ;;  %v1001_v34 = vsub.f32 %v867_v19, %v982_v32 }
 0xe00   :  { %v1003_v9 = vmul.f32 1.442695, %v995_v63  ;;  %v1005_v20 = vmul.f32 1.442695, %v996_v4  ;;  %v1007_v24 = vmul.f32 1.442695, %v997_v17 }
 0xe01   :  { %v1009_v31 = vmul.f32 1.442695, %v998_v23  ;;  %v1011_v61 = vmul.f32 1.442695, %v999_v27  ;;  %v1013_v35 = vmul.f32 1.442695, %v1000_v57  ;;  %v1002_v36 = vsub.f32 %v2613_v56, %v986_v2 }
 0xe02   :  { %1904 = vpow2.f32 %v1003_v9  ;;  %v1015_v12 = vmul.f32 1.442695, %v1001_v34 }
 0xe03   :  { %1906 = vpow2.f32 %v1005_v20  ;;  %v1017_v38 = vmul.f32 1.442695, %v1002_v36 }
 0xe04   :  { %1908 = vpow2.f32 %v1007_v24 }
 0xe05   :  { %1910 = vpow2.f32 %v1009_v31 }
 0xe06   :  { %1912 = vpow2.f32 %v1011_v61 }
 0xe07   :  { %1914 = vpow2.f32 %v1013_v35 }
 0xe08   :  { %1916 = vpow2.f32 %v1015_v12 }
 0xe09   :  { %1918 = vpow2.f32 %v1017_v38 }
 0xe0f   :  { %v1905_v33 = vpop.eup %1904 }
 0xe10   :  { %1028 = vperm.xlu0 %1870, %v1905_v33   ;;  %v1907_v7 = vpop.eup %1906 }
 0xe11   :  { %v1909_v37 = vpop.eup %1908 }
 0xe12   :  { %v1911_v16 = vpop.eup %1910 }
 0xe13   :  { %v1913_v39 = vpop.eup %1912 }
 0xe14   :  { %1031 = vperm.xlu0 %1870, %v1907_v7   ;;  %v1915_v41 = vpop.eup %1914 }
 0xe15   :  { %v1917_v19 = vpop.eup %1916 }
 0xe16   :  { %v1919_v42 = vpop.eup %1918 }
 0xe18   :  { %1034 = vperm.xlu0 %1870, %v1909_v37  }
 0xe1c   :  { %1037 = vperm.xlu0 %1870, %v1911_v16  }
 0xe20   :  { %1040 = vperm.xlu0 %1870, %v1913_v39  }
 0xe24   :  { %1043 = vperm.xlu0 %1870, %v1915_v41  }
 0xe28   :  { %1046 = vperm.xlu0 %1870, %v1917_v19  }
 0xe2c   :  { %1049 = vperm.xlu0 %1870, %v1919_v42  }
 0xe8b   :  { %v1029_v43 = vpop.permute.xlu0 %1028 }
 0xe8c   :  { %v1054_v53 = vrot.slane %v1029_v43, %v2603_v40 }
 0xe8f   :  { %v1032_v44 = vpop.permute.xlu0 %1031 }
 0xe90   :  { %v1058_v48 = vrot.slane %v1032_v44, %v2603_v40 }
 0xe92   :  { %v1083_v63 = vsel %vm935_vm3, %v1058_v48, %v1054_v53 }
 0xe93   :  { %v1035_v56 = vpop.permute.xlu0 %1034 }
 0xe94   :  { %v1062_v52 = vrot.slane %v1035_v56, %v2603_v40 }
 0xe96   :  { %v1084_v9 = vsel %vm937_vm4, %v1062_v52, %v1083_v63 }
 0xe97   :  { %v1038_v45 = vpop.permute.xlu0 %1037 }
 0xe98   :  { %v1066_v54 = vrot.slane %v1038_v45, %v2603_v40 }
 0xe9a   :  { %v1085_v17 = vsel %vm939_vm5, %v1066_v54, %v1084_v9 }
 0xe9b   :  { %v1041_v46 = vpop.permute.xlu0 %1040 }
 0xe9c   :  { %v1070_v55 = vrot.slane %v1041_v46, %v2603_v40 }
 0xe9e   :  { %v1086_v20 = vsel %vm941_vm6, %v1070_v55, %v1085_v17 }
 0xe9f   :  { %v1044_v47 = vpop.permute.xlu0 %1043 }
 0xea0   :  { %v1074_v4 = vrot.slane %v1044_v47, %v2603_v40 }
 0xea2   :  { %v1087_v23 = vsel %vm943_vm7, %v1074_v4, %v1086_v20 }
 0xea3   :  { %v1047_v58 = vpop.permute.xlu0 %1046 }
 0xea4   :  { %v1078_v13 = vrot.slane %v1047_v58, %v2603_v40 }
 0xea6   :  { %v1088_v26 = vsel %vm945_vm8, %v1078_v13, %v1087_v23 }
 0xea7   :  { %v1050_v22 = vpop.permute.xlu0 %1049 }
 0xea8   :  { %v1082_v24 = vrot.slane %v1050_v22, %v2603_v40 }
 0xeaa   :  { %v1089_v27 = vsel %vm947_vm9, %v1082_v24, %v1088_v26 }
 0xeab   :  { %v1091_v31 = vsel %vm950_vm10, %v1089_v27, 0.0 }
 0xeac   :  { %1092 = vadd.xlane.f32.xlu0 %v1091_v31 }
 0xf35   :  { %v1093_v32 = vpop.xlane.xlu0 %1092 }
 0xf36   :  { %1920 = vrcp.f32 %v1093_v32 }
 0xf43   :  { %v1921_v57 = vpop.eup %1920 }
 0xf44   :  { %v1115_v61 = vrot.slane %v1921_v57, %v2626_v6  ;;  %v1099_v2 = vrot.slane %v1921_v57, %v2607_v50  ;;  %v1103_v36 = vrot.slane %v1921_v57, %v2609_v51  ;;  %v1107_v38 = vrot.slane %v1921_v57, %v2618_v59 }
 0xf45   :  { %v1111_v44 = vrot.slane %v1921_v57, %v2623_v0  ;;  %v1119_v50 = vrot.slane %v1921_v57, %v2629_v10  ;;  %v1123_v51 = vrot.slane %v1921_v57, %v2632_v15  ;;  %v1291_v0 = vld [vmem:[%s2822_s16 + $0x10] sm:$0xff]  ;;  %v1289_v10 = vld [vmem:[%s2822_s16] sm:$0xff]  ;;  %v1296_v15 = vld [vmem:[%s2823_s17 + $0x18] sm:$0xff] }
 0xf46   :  { %v1140_v34 = vmul.f32 %v1913_v39, %v1115_v61  ;;  %v1136_v35 = vmul.f32 %v1905_v33, %v1099_v2  ;;  %v1137_v12 = vmul.f32 %v1907_v7, %v1103_v36  ;;  %v1138_v43 = vmul.f32 %v1909_v37, %v1107_v38  ;;  %1813 = vmatpush3.msra.mxu0 %v1296_v15  ;;  %v1294_v37 = vld [vmem:[%s2823_s17 + $0x8] sm:$0xff] }
 0xf47   :  { %v1139_v6 = vmul.f32 %v1911_v16, %v1111_v44  ;;  %v1141_v33 = vmul.f32 %v1915_v41, %v1119_v50  ;;  %v1142_v39 = vmul.f32 %v1917_v19, %v1123_v51  ;;  %v1127_v7 = vrot.slane %v1921_v57, %v2605_v49  ;;  %v1290_v49 = vld [vmem:[%s2822_s16 + $0x8] sm:$0xff]  ;;  %1814 = vmatprep.subr.mxu0 %v2148_v1 }
 0xf48   :  { %1165 = vperm.xlu0 %1870, %v1140_v34   ;;  %1153 = vperm.xlu1 %1871, %v1136_v35  }
 0xf49   :  { %v1143_v59 = vmul.f32 %v1919_v42, %v1127_v7 }
 0xf4c   :  { %602 = vrot.lane.b32.xlu0 %v2482_v28, %s2152_s28  ;;  %1156 = vperm.xlu1 %1871, %v1137_v12   ;;  %v1292_v28 = vld [vmem:[%s2822_s16 + $0x18] sm:$0xff] }
 0xf4d   :  { %1824 = vmatpush3.msra.mxu1 %v1292_v28 }
 0xf4e   :  { %1825 = vmatprep.subr.mxu1 %v2148_v1 }
 0xf4f   :  { %1826 = vmatpush3.msra.mxu1 %v1291_v0 }
 0xf50   :  { %1159 = vperm.xlu1 %1871, %v1138_v43   ;;  %1827 = vmatprep.subr.mxu1 %v2148_v1 }
 0xf51   :  { %1828 = vmatpush3.msra.mxu1 %v1290_v49 }
 0xf52   :  { %1829 = vmatprep.subr.mxu1 %v2148_v1 }
 0xf53   :  { %1830 = vmatpush3.msra.mxu1 %v1289_v10 }
 0xf54   :  { %1162 = vperm.xlu1 %1871, %v1139_v6   ;;  %1841 = vmatprep.subr.mxu1 %v2148_v1 }
 0xf58   :  { %1168 = vperm.xlu1 %1871, %v1141_v33  }
 0xf5c   :  { %1171 = vperm.xlu1 %1871, %v1142_v39  }
 0xf60   :  { %1174 = vperm.xlu1 %1871, %v1143_v59  }
 0xf64   :  { %733 = vrot.lane.b32.xlu1 %v2542_v3, %s2150_s15  ;;  %v1295_v3 = vld [vmem:[%s2823_s17 + $0x10] sm:$0xff] }
 0xf65   :  { %1815 = vmatpush3.msra.mxu0 %v1295_v3 }
 0xf66   :  { %1816 = vmatprep.subr.mxu0 %v2148_v1 }
 0xf67   :  { %1817 = vmatpush3.msra.mxu0 %v1294_v37 }
 0xf68   :  { %329 = vrot.lane.b32.xlu1 %v2372_v29, %s2152_s28  ;;  %v1293_v29 = vld [vmem:[%s2823_s17] sm:$0xff]  ;;  %1818 = vmatprep.subr.mxu0 %v2148_v1 }
 0xf69   :  { %1819 = vmatpush3.msra.mxu0 %v1293_v29 }
 0xf6a   :  { %1834 = vmatprep.subr.mxu0 %v2148_v1 }
 0xf6c   :  { %465 = vrot.lane.b32.xlu1 %v2427_v60, %s2152_s28 }
 0xf70   :  { %739 = vrot.lane.b32.xlu1 %v2538_v62, %s2152_s28 }
 0xfc3   :  { %v1166_v16 = vpop.permute.xlu0 %1165  ;;  %v1154_v41 = vpop.permute.xlu1 %1153 }
 0xfc4   :  { %v1225_v60 = vmul.f32 %v1154_v41, %v2549_v5  ;;  %v1229_v47 = vmul.f32 %v1166_v16, %v2583_v21  ;;  %v1179_v26 = vrot.slane %v1154_v41, %v2603_v40  ;;  %v1195_v33 = vrot.slane %v1166_v16, %v2603_v40 }
 0xfc6   :  { %v1233_v19 = vsel %vm204_vm1, %v1225_v60, 0.0  ;;  %v1261_v55 = vsel %vm204_vm1, %v1229_v47, 0.0 }
 0xfc7   :  { %v603_v42 = vpop.permute.xlu0 %602  ;;  %v1157_v56 = vpop.permute.xlu1 %1156  ;;  %v1234_v46 = vrot.slane %v1233_v19, 4  ;;  %v1262_v13 = vrot.slane %v1261_v55, 4 }
 0xfc8   :  { %1665 = vst.msk [vmem:[%s2829_s23 + $0x10] sm:$0xff] %vm204_vm1, %v603_v42  ;;  %v1226_v45 = vmul.f32 %v1157_v56, %v2555_v8  ;;  %v1183_v20 = vrot.slane %v1157_v56, %v2603_v40 }
 0xfc9   :  { %v1235_v53 = vadd.f32 %v1234_v46, %v1233_v19  ;;  %v1263_v57 = vadd.f32 %v1262_v13, %v1261_v55 }
 0xfca   :  { %v1240_v62 = vsel %vm204_vm1, %v1226_v45, 0.0  ;;  %v1208_v2 = vsel %vm935_vm3, %v1183_v20, %v1179_v26 }
 0xfcb   :  { %v1241_v48 = vrot.slane %v1240_v62, 4  ;;  %v1160_v52 = vpop.permute.xlu1 %1159  ;;  %v1236_v17 = vrot.slane %v1235_v53, 2  ;;  %v1264_v59 = vrot.slane %v1263_v57, 2 }
 0xfcc   :  { %v1227_v5 = vmul.f32 %v1160_v52, %v2577_v18  ;;  %v1187_v18 = vrot.slane %v1160_v52, %v2603_v40 }
 0xfcd   :  { %v1242_v58 = vadd.f32 %v1241_v48, %v1240_v62  ;;  %v1237_v61 = vadd.f32 %v1236_v17, %v1235_v53  ;;  %v1265_v45 = vadd.f32 %v1264_v59, %v1263_v57  ;;  %v1457_v57 = vld [vmem:[#allocation13 + $0x8] sm:$0xff] }
 0xfce   :  { %v1247_v54 = vsel %vm204_vm1, %v1227_v5, 0.0  ;;  %v1209_v36 = vsel %vm937_vm4, %v1187_v18, %v1208_v2 }
 0xfcf   :  { %v1248_v63 = vrot.slane %v1247_v54, 4  ;;  %v1163_v4 = vpop.permute.xlu1 %1162  ;;  %v1243_v22 = vrot.slane %v1242_v58, 2  ;;  %v1238_v28 = vrot.slane %v1237_v61, 1 }
 0xfd0   :  { %v1228_v9 = vmul.f32 %v1163_v4, %v2562_v11  ;;  %v1191_v31 = vrot.slane %v1163_v4, %v2603_v40 }
 0xfd1   :  { %v1249_v8 = vadd.f32 %v1248_v63, %v1247_v54  ;;  %v1244_v35 = vadd.f32 %v1243_v22, %v1242_v58  ;;  %v1266_v63 = vrot.slane %v1265_v45, 1 }
 0xfd2   :  { %v1254_v21 = vsel %vm204_vm1, %v1228_v9, 0.0  ;;  %v1210_v6 = vsel %vm939_vm5, %v1191_v31, %v1209_v36  ;;  %v1545_v36 = vld [vmem:[#allocation16 + $0x18] sm:$0xff] }
 0xfd3   :  { %v1255_v23 = vrot.slane %v1254_v21, 4  ;;  %v1169_v24 = vpop.permute.xlu1 %1168  ;;  %v1250_v27 = vrot.slane %v1249_v8, 2  ;;  %v1245_v49 = vrot.slane %v1244_v35, 1  ;;  %v1211_v10 = vsel %vm941_vm6, %v1195_v33, %v1210_v6 }
 0xfd4   :  { %v1230_v32 = vmul.f32 %v1169_v24, %v2569_v14  ;;  %v1199_v50 = vrot.slane %v1169_v24, %v2603_v40  ;;  %v1267_v18 = vadd.f32 %v1266_v63, %v1265_v45 }
 0xfd5   :  { %v1256_v11 = vadd.f32 %v1255_v23, %v1254_v21  ;;  %v1251_v44 = vadd.f32 %v1250_v27, %v1249_v8  ;;  %v1246_v47 = vadd.f32 %v1245_v49, %v1244_v35  ;;  %v744_v35 = vld [vmem:[%s2858_s12] sm:$0xff]  ;;  %v1680_v49 = vld [vmem:[#allocation17] ss:$0 sm:$0xff] }
 0xfd6   :  { %v1268_v34 = vsel %vm204_vm1, %v1230_v32, 0.0  ;;  %v1212_v41 = vsel %vm943_vm7, %v1199_v50, %v1211_v10 }
 0xfd7   :  { %v1257_v12 = vrot.slane %v1256_v11, 2  ;;  %v1269_v38 = vrot.slane %v1268_v34, 4  ;;  %v1172_v43 = vpop.permute.xlu1 %1171  ;;  %v1252_v29 = vrot.slane %v1251_v44, 1 }
 0xfd8   :  { %v1231_v14 = vmul.f32 %v1172_v43, %v2591_v25  ;;  %v1203_v7 = vrot.slane %v1172_v43, %v2603_v40  ;;  %v1542_v43 = vld [vmem:[#allocation16] sm:$0xff] }
 0xfd9   :  { %v1258_v51 = vadd.f32 %v1257_v12, %v1256_v11  ;;  %v1270_v39 = vadd.f32 %v1269_v38, %v1268_v34  ;;  %v1253_v5 = vadd.f32 %v1252_v29, %v1251_v44  ;;  %v1456_v34 = vld [vmem:[#allocation13] sm:$0xff] }
 0xfda   :  { %v1275_v0 = vsel %vm204_vm1, %v1231_v14, 0.0  ;;  %v1213_v42 = vsel %vm945_vm8, %v1203_v7, %v1212_v41  ;;  %v1544_v12 = vld [vmem:[#allocation16 + $0x10] sm:$0xff]  ;;  %v1543_v38 = vld [vmem:[#allocation16 + $0x8] sm:$0xff] }
 0xfdb   :  { %v1271_v15 = vrot.slane %v1270_v39, 2  ;;  %v1276_v3 = vrot.slane %v1275_v0, 4  ;;  %v1175_v37 = vpop.permute.xlu1 %1174  ;;  %v1259_v60 = vrot.slane %v1258_v51, 1 }
 0xfdc   :  { %v1207_v25 = vrot.slane %v1175_v37, %v2603_v40  ;;  %v1232_v16 = vmul.f32 %v1175_v37, %v2598_v30  ;;  %v1239_v30 = vadd.f32 %v1238_v28, %v1237_v61 }
 0xfdd   :  { %v1272_v19 = vadd.f32 %v1271_v15, %v1270_v39  ;;  %v1277_v56 = vadd.f32 %v1276_v3, %v1275_v0  ;;  %v1260_v53 = vadd.f32 %v1259_v60, %v1258_v51  ;;  %v1679_v39 = vld [vmem:[#allocation14] ss:$0 sm:$0xff] }
 0xfde   :  { %v1214_v46 = vsel %vm947_vm9, %v1207_v25, %v1213_v42  ;;  %v1282_v62 = vsel %vm204_vm1, %v1232_v16, 0.0  ;;  %v1305_v4 = vsel %vm935_vm3, %v1246_v47, %v1239_v30 }
 0xfdf   :  { %v1278_v48 = vrot.slane %v1277_v56, 2  ;;  %1216 = vst.msk [vmem:[%s2830_s24] sm:$0xff] %vm950_vm10, %v1214_v46  ;;  %v1283_v40 = vrot.slane %v1282_v62, 4  ;;  %v734_v52 = vpop.permute.xlu1 %733  ;;  %v1273_v54 = vrot.slane %v1272_v19, 1  ;;  %v1306_v17 = vsel %vm937_vm4, %v1253_v5, %v1305_v4 }
 0xfe0   :  { %1671 = vst.msk [vmem:[%s2828_s22 + $0x18] sm:$0xff] %vm204_vm1, %v734_v52  ;;  %1832 = vmatmul.mubr.msk.f32.vlgmr.msra.gmra.mxu1 %vm204_vm1, %v734_v52  ;;  %v1307_v20 = vsel %vm939_vm5, %v1260_v53, %v1306_v17 }
 0xfe1   :  { %v1279_v55 = vadd.f32 %v1278_v48, %v1277_v56  ;;  %v1284_v58 = vadd.f32 %v1283_v40, %v1282_v62  ;;  %1849 = vmatprep.mubr.msk.f32.mxu1 %vm2149_vm0, %v2148_v1  ;;  %v1274_v21 = vadd.f32 %v1273_v54, %v1272_v19  ;;  %v1308_v27 = vsel %vm941_vm6, %v1267_v18, %v1307_v20 }
 0xfe2   :  { %1842 = vmatpush3.msra.mxu1 %v1545_v36 }
 0xfe3   :  { %v1280_v9 = vrot.slane %v1279_v55, 1  ;;  %v1285_v8 = vrot.slane %v1284_v58, 2  ;;  %v330_v13 = vpop.permute.xlu1 %329  ;;  %v1309_v32 = vsel %vm943_vm7, %v1274_v21, %v1308_v27  ;;  %1843 = vmatprep.subr.mxu1 %v2148_v1 }
 0xfe4   :  { %332 = vst.msk [vmem:[%s2829_s23] sm:$0xff] %vm204_vm1, %v330_v13  ;;  %1844 = vmatpush3.msra.mxu1 %v1544_v12 }
 0xfe5   :  { %v1286_v22 = vadd.f32 %v1285_v8, %v1284_v58  ;;  %v1281_v23 = vadd.f32 %v1280_v9, %v1279_v55  ;;  %1845 = vmatprep.subr.mxu1 %v2148_v1 }
 0xfe6   :  { %1846 = vmatpush3.msra.mxu1 %v1543_v38 }
 0xfe7   :  { %v1287_v24 = vrot.slane %v1286_v22, 1  ;;  %v466_v26 = vpop.permute.xlu1 %465  ;;  %v1310_v11 = vsel %vm945_vm8, %v1281_v23, %v1309_v32  ;;  %1847 = vmatprep.subr.mxu1 %v2148_v1 }
 0xfe8   :  { %1658 = vst.msk [vmem:[%s2829_s23 + $0x8] sm:$0xff] %vm204_vm1, %v466_v26  ;;  %1848 = vmatpush3.msra.mxu1 %v1542_v43 }
 0xfe9   :  { %v1288_v31 = vadd.f32 %v1287_v24, %v1286_v22 }
 0xfeb   :  { %v740_v61 = vpop.permute.xlu1 %739  ;;  %v1311_v2 = vsel %vm947_vm9, %v1288_v31, %v1310_v11 }
 0xfec   :  { %1672 = vst.msk [vmem:[%s2829_s23 + $0x18] sm:$0xff] %vm204_vm1, %v740_v61  ;;  %1821 = vmatmul.mubr.msk.f32.vlgmr.msra.gmra.mxu0 %vm204_vm1, %v1311_v2 }
 0xfed   :  { %1835 = vmatpush3.msra.mxu0 %v1457_v57  ;;  %1838 = vmatprep.mubr.msk.f32.mxu0 %vm2149_vm0, %v2148_v1 }
 0xfee   :  { %1836 = vmatprep.subr.mxu0 %v2148_v1 }
 0xfef   :  { %1837 = vmatpush3.msra.mxu0 %v1456_v34 }
 0xff0   :  { %1839 = vmatmul.mubr.msk.f32.vlgmr.msra.gmra.mxu0 %vm1458_vm11, %v744_v35 }
0x10a0   :  { %v1452_v44 = vpop.f32.mrf.mxu1 }
0x10a2   :  { %v1833_v6 = vpop.f32.mrf.mxu1 }
0x10ac   :  { %v1380_v50 = vpop.f32.mrf.mxu0 }
0x10ad   :  { %v1453_v33 = vadd.f32 %v1452_v44, %v1380_v50 }
0x10ae   :  { %v1822_v14 = vpop.f32.mrf.mxu0 }
0x10b0   :  { %v1528_v51 = vpop.f32.mrf.mxu0 }
0x10b1   :  { %v1532_v7 = vadd.f32 %v1528_v51, %v1453_v33 }
0x10b2   :  { %v1840_v59 = vpop.f32.mrf.mxu0 }
0x10b3   :  { %v1540_v28 = vadd.f32 %v1679_v39, %v1532_v7 }
0x10b5   :  { %1922 = vtanh.f32 %v1540_v28 }
0x10c2   :  { %v1923_v0 = vpop.eup %1922 }
0x10c3   :  { %1850 = vmatmul.mubr.msk.f32.vlgmr.msra.gmra.mxu1 %vm204_vm1, %v1923_v0 }
0x1183   :  { %v1622_v10 = vpop.f32.mrf.mxu1 }
0x1184   :  { %v1623_v15 = vadd.f32 %v1680_v49, %v1622_v10 }
0x1185   :  { %v1851_v3 = vpop.f32.mrf.mxu1 }
0x1186   :  { %1626 = vst [vmem:[%s2831_s25] sm:$0xff] %v1623_v15 }
0x1187   :  { %1643 = vsyncpa [#allocation4], 1 }
0x1188   :  { %1644 = vsyncpa [#allocation6], 1 }
0x1189   :  { %1645 = vsyncpa [#allocation9], 1 }
0x118a   :  { %1646 = vsyncpa [#allocation12], 1 }
0x118b   :  { %1647 = vsyncpa [#allocation15], 1 }
0x118c   :  { %1648 = vsyncpa [#allocation18], 1 }

</bundles_post_ra>
